<compile_context>
chip_gen: v7x
topology: tpu7x:2x2x1
jax: 0.10.0
libtpu: 0.0.40
codegen_flags: <defaults>
</compile_context>

<pallas_src>
import functools

import numpy as np

import jax
import jax.numpy as jnp
from jax.experimental import pallas as pl
from jax.experimental.pallas import tpu as pltpu

MXU_DTYPE = jnp.bfloat16  # native-rate MXU inputs on v5e/v6e/v7x; f32 accumulation.

# Static LeNet geometry (32x32x1 input).
_H0, _W0 = 32, 32
_KH = 5
_OH1, _PH1, _PW1, _OC1 = 28, 14, 14, 6
_OH2, _PH2, _PW2, _OC2 = 10, 5, 5, 16
_LANE = 128
_FC_K = _PH2 * _LANE          # 640
_FC_H1, _FC_H2, _NCLS = 120, 84, 10


# ----------------------------------------------------------------------------
# Fused kernel
# ----------------------------------------------------------------------------
def _lenet_kernel(x_ref, w1c_ref, b1c_ref, w2c_ref, b2c_ref,
                  w1f_ref, b1f_ref, w2f_ref, b2f_ref, w3f_ref, b3f_ref,
                  o_ref, act1_ref, *, B):
    """Whole LeNet forward for one block of B images.

    Slab layout: row (y*B + b) of a slab holds image b's row y, so conv row
    shifts are contiguous slices and the 2x2 pool's H pairs are adjacent
    B-row chunks.  The pool's W direction comes from the even/odd column
    parity packed into the weights.

      x_ref   : (32*B, 32)   input rows, f32
      w1c_ref : (160, 256)   conv1 banded weights [even || odd] parity blocks
      b1c_ref : (1, 128)     conv1 bias tiled over pooled columns (f32)
      w2c_ref : (640, 256)   conv2 banded weights
      b2c_ref : (1, 128)
      w*f_ref : fc1/fc2/fc3 weights with hidden widths padded to 128
      o_ref   : (B, 10)      logits
      act1_ref: (14*B, 128)  VMEM scratch holding the pool1 output slab
    """
    cdt = w1c_ref.dtype

    # ---- conv1 + bias + ReLU + 2x2 pool: one (28B,160) @ (160,256) matmul --
    lhs1 = jnp.concatenate(
        [x_ref[ki * B:(ki + _OH1) * B, :] for ki in range(_KH)],
        axis=1).astype(cdt)                                    # (28B, 5*32)
    r1 = jnp.dot(lhs1, w1c_ref[...], preferred_element_type=jnp.float32)
    m1 = jnp.maximum(r1[:, :_LANE], r1[:, _LANE:])             # pool along W
    m1 = jnp.maximum(m1 + b1c_ref[...], 0.0)                   # bias+ReLU (commute with max)
    for p in range(_PH1):                                      # pool along H
        act1_ref[p * B:(p + 1) * B, :] = jnp.maximum(
            m1[(2 * p) * B:(2 * p + 1) * B, :],
            m1[(2 * p + 1) * B:(2 * p + 2) * B, :])

    # ---- conv2 + bias + ReLU + 2x2 pool: one (10B,640) @ (640,256) matmul --
    lhs2 = jnp.concatenate(
        [act1_ref[ki * B:(ki + _OH2) * B, :] for ki in range(_KH)],
        axis=1).astype(cdt)                                    # (10B, 5*128)
    r2 = jnp.dot(lhs2, w2c_ref[...], preferred_element_type=jnp.float32)
    m2 = jnp.maximum(r2[:, :_LANE], r2[:, _LANE:])
    m2 = jnp.maximum(m2 + b2c_ref[...], 0.0)
    xfc = jnp.concatenate(                                     # flatten -> (B, 640)
        [jnp.maximum(m2[(2 * p) * B:(2 * p + 1) * B, :],
                     m2[(2 * p + 1) * B:(2 * p + 2) * B, :])
         for p in range(_PH2)], axis=1).astype(cdt)

    # ---- fc1 -> ReLU -> fc2 -> ReLU -> fc3 ---------------------------------
    h = jnp.dot(xfc, w1f_ref[...], preferred_element_type=jnp.float32) + b1f_ref[...]
    h = jnp.maximum(h, 0.0).astype(cdt)
    h = jnp.dot(h, w2f_ref[...], preferred_element_type=jnp.float32) + b2f_ref[...]
    h = jnp.maximum(h, 0.0).astype(cdt)
    o_ref[...] = (jnp.dot(h, w3f_ref[...], preferred_element_type=jnp.float32)
                  + b3f_ref[...]).astype(o_ref.dtype)


# ----------------------------------------------------------------------------
# Wrapper
# ----------------------------------------------------------------------------
def _round_up(a, m):
    return ((a + m - 1) // m) * m


def net_forward(x_nchw, p):
    """x_nchw: (N, 1, 32, 32) float32 -> logits (N, 10) float32."""
    N, C, H, W = x_nchw.shape
    assert (C, H, W) == (1, _H0, _W0), "LeNet expects (N, 1, 32, 32) inputs"
    B = min(32, _round_up(N, 8))          # images per grid step (multiple of 8)
    n_pad = _round_up(N, B)
    nb = n_pad // B

    x = x_nchw.reshape(N, _H0, _W0)
    if n_pad != N:
        x = jnp.pad(x, ((0, n_pad - N), (0, 0), (0, 0)))
    # (nb, B, 32, 32) -> (nb, 32, B, 32) -> (nb*32*B, 32): image-minor slabs.
    x_slab = (x.reshape(nb, B, _H0, _W0)
               .transpose(0, 2, 1, 3)
               .reshape(nb * _H0 * B, _W0))

    kernel = functools.partial(_lenet_kernel, B=B)
    wbytes = sum(int(p[k].size) * p[k].dtype.itemsize
                 for k in ("w1c", "w2c", "w1f", "w2f", "w3f"))
    flops = 2 * n_pad * (_OH1 * 160 * 256 + _OH2 * 640 * 256
                         + _FC_K * _LANE + _LANE * _LANE + _LANE * _NCLS)
    bytes_accessed = int(4 * (n_pad * _H0 * _W0 + n_pad * _NCLS) + wbytes)

    out = pl.pallas_call(
        kernel,
        out_shape=jax.ShapeDtypeStruct((n_pad, _NCLS), jnp.float32),
        grid=(nb,),
        in_specs=[
            pl.BlockSpec((_H0 * B, _W0), lambda i: (i, 0)),            # x slab
            pl.BlockSpec((_KH * _W0, 2 * _LANE), lambda i: (0, 0)),    # conv1 W
            pl.BlockSpec((1, _LANE), lambda i: (0, 0)),                # conv1 b
            pl.BlockSpec((_KH * _LANE, 2 * _LANE), lambda i: (0, 0)),  # conv2 W
            pl.BlockSpec((1, _LANE), lambda i: (0, 0)),                # conv2 b
            pl.BlockSpec((_FC_K, _LANE), lambda i: (0, 0)),            # fc1 W
            pl.BlockSpec((1, _LANE), lambda i: (0, 0)),                # fc1 b
            pl.BlockSpec((_LANE, _LANE), lambda i: (0, 0)),            # fc2 W
            pl.BlockSpec((1, _LANE), lambda i: (0, 0)),                # fc2 b
            pl.BlockSpec((_LANE, _NCLS), lambda i: (0, 0)),            # fc3 W
            pl.BlockSpec((1, _NCLS), lambda i: (0, 0)),                # fc3 b
        ],
        out_specs=pl.BlockSpec((B, _NCLS), lambda i: (i, 0)),
        scratch_shapes=[pltpu.VMEM((_PH1 * B, _LANE), jnp.float32)],
        compiler_params=pltpu.CompilerParams(dimension_semantics=("parallel",)),
        cost_estimate=pl.CostEstimate(flops=int(flops), transcendentals=0,
                                      bytes_accessed=bytes_accessed),
    )(x_slab, p["w1c"], p["b1c"], p["w2c"], p["b2c"],
      p["w1f"], p["b1f"], p["w2f"], p["b2f"], p["w3f"], p["b3f"])
    return out[:N]


# ----------------------------------------------------------------------------
# One-time parameter packing (outside the jitted forward)
# ----------------------------------------------------------------------------
def pack_params(tp):
    """Pack PyTorch-layout weights into the kernel's banded / padded layouts."""
    w1 = np.asarray(tp["w1"], np.float32)     # (6, 1, 5, 5)
    b1 = np.asarray(tp["b1"], np.float32)
    w2 = np.asarray(tp["w2"], np.float32)     # (16, 6, 5, 5)
    b2 = np.asarray(tp["b2"], np.float32)

    # conv1: row = ki*32 + input_w ; col = parity*128 + pooled_w*6 + oc.
    w1c = np.zeros((_KH * _W0, 2 * _LANE), np.float32)
    for ki in range(_KH):
        for par in range(2):
            for t in range(_PW1):
                for kj in range(_KH):
                    j = 2 * t + par + kj
                    col0 = par * _LANE + t * _OC1
                    w1c[ki * _W0 + j, col0:col0 + _OC1] = w1[:, 0, ki, kj]
    b1c = np.zeros((1, _LANE), np.float32)
    for t in range(_PW1):
        b1c[0, t * _OC1:(t + 1) * _OC1] = b1

    # conv2: input lane = w_pos*6 + ic ; row = ki*128 + lane ;
    #        col = parity*128 + pooled_w*16 + oc.   Padding lanes stay zero.
    w2c = np.zeros((_KH * _LANE, 2 * _LANE), np.float32)
    for ki in range(_KH):
        for par in range(2):
            for t in range(_PW2):
                for kj in range(_KH):
                    w_pos = 2 * t + par + kj
                    for ic in range(_OC1):
                        row = ki * _LANE + w_pos * _OC1 + ic
                        col0 = par * _LANE + t * _OC2
                        w2c[row, col0:col0 + _OC2] = w2[:, ic, ki, kj]
    b2c = np.zeros((1, _LANE), np.float32)
    for t in range(_PW2):
        b2c[0, t * _OC2:(t + 1) * _OC2] = b2

    # fc1: our flat feature index = h*128 + w*16 + c; PyTorch .view(N,-1) on
    # NCHW uses c*25 + h*5 + w.  Hidden widths padded 120/84 -> 128 with zeros.
    fc1_w = np.asarray(tp["fc1_w"], np.float32)   # (120, 400)
    fc2_w = np.asarray(tp["fc2_w"], np.float32)   # (84, 120)
    fc3_w = np.asarray(tp["fc3_w"], np.float32)   # (10, 84)
    w1f = np.zeros((_FC_K, _LANE), np.float32)
    for h in range(_PH2):
        for w in range(_PW2):
            for c in range(_OC2):
                w1f[h * _LANE + w * _OC2 + c, :_FC_H1] = fc1_w[:, c * 25 + h * 5 + w]
    b1f = np.zeros((1, _LANE), np.float32)
    b1f[0, :_FC_H1] = np.asarray(tp["fc1_b"], np.float32)
    w2f = np.zeros((_LANE, _LANE), np.float32)
    w2f[:_FC_H1, :_FC_H2] = fc2_w.T
    b2f = np.zeros((1, _LANE), np.float32)
    b2f[0, :_FC_H2] = np.asarray(tp["fc2_b"], np.float32)
    w3f = np.zeros((_LANE, _NCLS), np.float32)
    w3f[:_FC_H2, :] = fc3_w.T
    b3f = np.asarray(tp["fc3_b"], np.float32).reshape(1, _NCLS)

    return {
        "w1c": jnp.asarray(w1c, MXU_DTYPE), "b1c": jnp.asarray(b1c),
        "w2c": jnp.asarray(w2c, MXU_DTYPE), "b2c": jnp.asarray(b2c),
        "w1f": jnp.asarray(w1f, MXU_DTYPE), "b1f": jnp.asarray(b1f),
        "w2f": jnp.asarray(w2f, MXU_DTYPE), "b2f": jnp.asarray(b2f),
        "w3f": jnp.asarray(w3f, MXU_DTYPE), "b3f": jnp.asarray(b3f),
    }


def init_torch_params(key):
    """Deterministic PyTorch-style U(-1/sqrt(fan_in), 1/sqrt(fan_in)) init."""
    ks = jax.random.split(key, 10)

    def u(k, shape, fan_in):
        bound = 1.0 / float(fan_in) ** 0.5
        return jax.random.uniform(k, shape, jnp.float32, -bound, bound)

    return {
        "w1": u(ks[0], (6, 1, 5, 5), 1 * 5 * 5),
        "b1": u(ks[1], (6,), 1 * 5 * 5),
        "w2": u(ks[2], (16, 6, 5, 5), 6 * 5 * 5),
        "b2": u(ks[3], (16,), 6 * 5 * 5),
        "fc1_w": u(ks[4], (120, 16 * 5 * 5), 16 * 5 * 5),
        "fc1_b": u(ks[5], (120,), 16 * 5 * 5),
        "fc2_w": u(ks[6], (84, 120), 120),
        "fc2_b": u(ks[7], (84,), 120),
        "fc3_w": u(ks[8], (10, 84), 84),
        "fc3_b": u(ks[9], (10,), 84),
    }


# ----------------------------------------------------------------------------
# Plain-JAX reference of the PyTorch forward (numerical self-check)
# ----------------------------------------------------------------------------
def reference_forward(x_nchw, tp):
    prec = jax.lax.Precision.HIGHEST
    y = jax.lax.conv_general_dilated(
        x_nchw, tp["w1"], window_strides=(1, 1), padding="VALID",
        dimension_numbers=("NCHW", "OIHW", "NCHW"), precision=prec)
    y = jnp.maximum(y + tp["b1"].reshape(1, -1, 1, 1), 0.0)
    y = jax.lax.reduce_window(y, jnp.array(-jnp.inf, dtype=y.dtype), jax.lax.max,
                              (1, 1, 2, 2), (1, 1, 2, 2), "VALID")
    y = jax.lax.conv_general_dilated(
        y, tp["w2"], window_strides=(1, 1), padding="VALID",
        dimension_numbers=("NCHW", "OIHW", "NCHW"), precision=prec)
    y = jnp.maximum(y + tp["b2"].reshape(1, -1, 1, 1), 0.0)
    y = jax.lax.reduce_window(y, jnp.array(-jnp.inf, dtype=y.dtype), jax.lax.max,
                              (1, 1, 2, 2), (1, 1, 2, 2), "VALID")
    y = y.reshape(y.shape[0], -1)
    y = jnp.maximum(jnp.dot(y, tp["fc1_w"].T, precision=prec) + tp["fc1_b"], 0.0)
    y = jnp.maximum(jnp.dot(y, tp["fc2_w"].T, precision=prec) + tp["fc2_b"], 0.0)
    return jnp.dot(y, tp["fc3_w"].T, precision=prec) + tp["fc3_b"]


if __name__ == "__main__":
    key = jax.random.PRNGKey(0)
    kp, kx = jax.random.split(key)
    torch_params = init_torch_params(kp)
    params = pack_params(torch_params)            # one-time packing, outside jit
    # fc1 expects 16*5*5 features => the classic 32x32 single-channel input.
    x = jax.random.normal(kx, (2, 1, 32, 32), jnp.float32)

    out = jax.jit(net_forward)(x, params)
    out = jax.block_until_ready(out)
    assert out.shape == (2, 10) and out.dtype == jnp.float32

    ref = reference_forward(x, torch_params)
    err = float(jnp.max(jnp.abs(out - ref)))
    tol = 5e-3 if MXU_DTYPE == jnp.float32 else 1e-1   # bf16 MXU inputs
    assert err < tol, f"max abs error vs reference = {err}"

    print("KERNEL_OK")
</pallas_src>

<mosaic_0001>
module attributes {stable_mosaic.version = 11 : i64} {
  func.func @_lenet_kernel(%arg0: i32, %arg1: memref<256x32xf32, #tpu.memory_space<vmem>>, %arg2: memref<160x256xbf16, #tpu.memory_space<vmem>>, %arg3: memref<1x128xf32, #tpu.memory_space<vmem>>, %arg4: memref<640x256xbf16, #tpu.memory_space<vmem>>, %arg5: memref<1x128xf32, #tpu.memory_space<vmem>>, %arg6: memref<640x128xbf16, #tpu.memory_space<vmem>>, %arg7: memref<1x128xf32, #tpu.memory_space<vmem>>, %arg8: memref<128x128xbf16, #tpu.memory_space<vmem>>, %arg9: memref<1x128xf32, #tpu.memory_space<vmem>>, %arg10: memref<128x10xbf16, #tpu.memory_space<vmem>>, %arg11: memref<1x10xf32, #tpu.memory_space<vmem>>, %arg12: memref<8x10xf32, #tpu.memory_space<vmem>>, %arg13: memref<112x128xf32, #tpu.memory_space<vmem>>) attributes {dimension_semantics = [#tpu.dimension_semantics<parallel>], iteration_bounds = array<i64: 1>, scalar_prefetch = 0 : i64, scratch_operands = 1 : i64, tpu.core_type = #tpu.core_type<tc>, window_params = [{transform_indices = @transform_0, window_bounds = array<i64: 256, 32>}, {pipeline_mode = #tpu.pipeline_mode<synchronous>, transform_indices = @transform_1, window_bounds = array<i64: 160, 256>}, {pipeline_mode = #tpu.pipeline_mode<synchronous>, transform_indices = @transform_2, window_bounds = array<i64: 1, 128>}, {pipeline_mode = #tpu.pipeline_mode<synchronous>, transform_indices = @transform_3, window_bounds = array<i64: 640, 256>}, {pipeline_mode = #tpu.pipeline_mode<synchronous>, transform_indices = @transform_4, window_bounds = array<i64: 1, 128>}, {pipeline_mode = #tpu.pipeline_mode<synchronous>, transform_indices = @transform_5, window_bounds = array<i64: 640, 128>}, {pipeline_mode = #tpu.pipeline_mode<synchronous>, transform_indices = @transform_6, window_bounds = array<i64: 1, 128>}, {pipeline_mode = #tpu.pipeline_mode<synchronous>, transform_indices = @transform_7, window_bounds = array<i64: 128, 128>}, {pipeline_mode = #tpu.pipeline_mode<synchronous>, transform_indices = @transform_8, window_bounds = array<i64: 1, 128>}, {pipeline_mode = #tpu.pipeline_mode<synchronous>, transform_indices = @transform_9, window_bounds = array<i64: 128, 10>}, {pipeline_mode = #tpu.pipeline_mode<synchronous>, transform_indices = @transform_10, window_bounds = array<i64: 1, 10>}, {transform_indices = @transform_11, window_bounds = array<i64: 8, 10>}]} {
    %c0 = arith.constant 0 : index
    %c0_0 = arith.constant 0 : index
    %0 = vector.load %arg1[%c0, %c0_0] : memref<256x32xf32, #tpu.memory_space<vmem>>, vector<224x32xf32>
    %c8 = arith.constant 8 : index
    %c0_1 = arith.constant 0 : index
    %1 = vector.load %arg1[%c8, %c0_1] : memref<256x32xf32, #tpu.memory_space<vmem>>, vector<224x32xf32>
    %c16 = arith.constant 16 : index
    %c0_2 = arith.constant 0 : index
    %2 = vector.load %arg1[%c16, %c0_2] : memref<256x32xf32, #tpu.memory_space<vmem>>, vector<224x32xf32>
    %c24 = arith.constant 24 : index
    %c0_3 = arith.constant 0 : index
    %3 = vector.load %arg1[%c24, %c0_3] : memref<256x32xf32, #tpu.memory_space<vmem>>, vector<224x32xf32>
    %c32 = arith.constant 32 : index
    %c0_4 = arith.constant 0 : index
    %4 = vector.load %arg1[%c32, %c0_4] : memref<256x32xf32, #tpu.memory_space<vmem>>, vector<224x32xf32>
    %5 = tpu.concatenate %0, %1, %2, %3, %4 in 1 : vector<224x32xf32>, vector<224x32xf32>, vector<224x32xf32>, vector<224x32xf32>, vector<224x32xf32> -> vector<224x160xf32>
    %6 = arith.truncf %5 : vector<224x160xf32> to vector<224x160xbf16>
    %c0_5 = arith.constant 0 : index
    %c0_6 = arith.constant 0 : index
    %7 = vector.load %arg2[%c0_5, %c0_6] : memref<160x256xbf16, #tpu.memory_space<vmem>>, vector<160x256xbf16>
    %cst = arith.constant dense<0.000000e+00> : vector<224x256xf32>
    %8 = tpu.matmul %6, %7, %cst {dimension_numbers = #tpu.dot_dimension_numbers<[1], [0], [0], [1], [0, 0, 1, 1], [], []>} : vector<224x160xbf16>, vector<160x256xbf16>, vector<224x256xf32> -> vector<224x256xf32>
    %9 = vector.extract_strided_slice %8 {offsets = [0, 0], sizes = [224, 128], strides = [1, 1]} : vector<224x256xf32> to vector<224x128xf32>
    %10 = vector.extract_strided_slice %8 {offsets = [0, 128], sizes = [224, 128], strides = [1, 1]} : vector<224x256xf32> to vector<224x128xf32>
    %11 = arith.maximumf %9, %10 : vector<224x128xf32>
    %c0_7 = arith.constant 0 : index
    %c0_8 = arith.constant 0 : index
    %12 = vector.load %arg3[%c0_7, %c0_8] : memref<1x128xf32, #tpu.memory_space<vmem>>, vector<1x128xf32>
    %13 = vector.broadcast %12 : vector<1x128xf32> to vector<224x128xf32>
    %14 = arith.addf %11, %13 : vector<224x128xf32>
    %cst_9 = arith.constant 0.000000e+00 : f32
    %15 = vector.broadcast %cst_9 : f32 to vector<224x128xf32>
    %16 = arith.maximumf %14, %15 : vector<224x128xf32>
    %17 = vector.extract_strided_slice %16 {offsets = [0, 0], sizes = [8, 128], strides = [1, 1]} : vector<224x128xf32> to vector<8x128xf32>
    %18 = vector.extract_strided_slice %16 {offsets = [8, 0], sizes = [8, 128], strides = [1, 1]} : vector<224x128xf32> to vector<8x128xf32>
    %19 = arith.maximumf %17, %18 : vector<8x128xf32>
    %c0_10 = arith.constant 0 : index
    %c0_11 = arith.constant 0 : index
    %20 = vector.load %arg13[%c0_10, %c0_11] : memref<112x128xf32, #tpu.memory_space<vmem>>, vector<8x128xf32>
    tpu.vector_store %arg13[%c0_10, %c0_11], %19 {strides = array<i32>} : memref<112x128xf32, #tpu.memory_space<vmem>>, vector<8x128xf32>,
    %21 = vector.extract_strided_slice %16 {offsets = [16, 0], sizes = [8, 128], strides = [1, 1]} : vector<224x128xf32> to vector<8x128xf32>
    %22 = vector.extract_strided_slice %16 {offsets = [24, 0], sizes = [8, 128], strides = [1, 1]} : vector<224x128xf32> to vector<8x128xf32>
    %23 = arith.maximumf %21, %22 : vector<8x128xf32>
    %c8_12 = arith.constant 8 : index
    %c0_13 = arith.constant 0 : index
    %24 = vector.load %arg13[%c8_12, %c0_13] : memref<112x128xf32, #tpu.memory_space<vmem>>, vector<8x128xf32>
    tpu.vector_store %arg13[%c8_12, %c0_13], %23 {strides = array<i32>} : memref<112x128xf32, #tpu.memory_space<vmem>>, vector<8x128xf32>,
    %25 = vector.extract_strided_slice %16 {offsets = [32, 0], sizes = [8, 128], strides = [1, 1]} : vector<224x128xf32> to vector<8x128xf32>
    %26 = vector.extract_strided_slice %16 {offsets = [40, 0], sizes = [8, 128], strides = [1, 1]} : vector<224x128xf32> to vector<8x128xf32>
    %27 = arith.maximumf %25, %26 : vector<8x128xf32>
    %c16_14 = arith.constant 16 : index
    %c0_15 = arith.constant 0 : index
    %28 = vector.load %arg13[%c16_14, %c0_15] : memref<112x128xf32, #tpu.memory_space<vmem>>, vector<8x128xf32>
    tpu.vector_store %arg13[%c16_14, %c0_15], %27 {strides = array<i32>} : memref<112x128xf32, #tpu.memory_space<vmem>>, vector<8x128xf32>,
    %29 = vector.extract_strided_slice %16 {offsets = [48, 0], sizes = [8, 128], strides = [1, 1]} : vector<224x128xf32> to vector<8x128xf32>
    %30 = vector.extract_strided_slice %16 {offsets = [56, 0], sizes = [8, 128], strides = [1, 1]} : vector<224x128xf32> to vector<8x128xf32>
    %31 = arith.maximumf %29, %30 : vector<8x128xf32>
    %c24_16 = arith.constant 24 : index
    %c0_17 = arith.constant 0 : index
    %32 = vector.load %arg13[%c24_16, %c0_17] : memref<112x128xf32, #tpu.memory_space<vmem>>, vector<8x128xf32>
    tpu.vector_store %arg13[%c24_16, %c0_17], %31 {strides = array<i32>} : memref<112x128xf32, #tpu.memory_space<vmem>>, vector<8x128xf32>,
    %33 = vector.extract_strided_slice %16 {offsets = [64, 0], sizes = [8, 128], strides = [1, 1]} : vector<224x128xf32> to vector<8x128xf32>
    %34 = vector.extract_strided_slice %16 {offsets = [72, 0], sizes = [8, 128], strides = [1, 1]} : vector<224x128xf32> to vector<8x128xf32>
    %35 = arith.maximumf %33, %34 : vector<8x128xf32>
    %c32_18 = arith.constant 32 : index
    %c0_19 = arith.constant 0 : index
    %36 = vector.load %arg13[%c32_18, %c0_19] : memref<112x128xf32, #tpu.memory_space<vmem>>, vector<8x128xf32>
    tpu.vector_store %arg13[%c32_18, %c0_19], %35 {strides = array<i32>} : memref<112x128xf32, #tpu.memory_space<vmem>>, vector<8x128xf32>,
    %37 = vector.extract_strided_slice %16 {offsets = [80, 0], sizes = [8, 128], strides = [1, 1]} : vector<224x128xf32> to vector<8x128xf32>
    %38 = vector.extract_strided_slice %16 {offsets = [88, 0], sizes = [8, 128], strides = [1, 1]} : vector<224x128xf32> to vector<8x128xf32>
    %39 = arith.maximumf %37, %38 : vector<8x128xf32>
    %c40 = arith.constant 40 : index
    %c0_20 = arith.constant 0 : index
    %40 = vector.load %arg13[%c40, %c0_20] : memref<112x128xf32, #tpu.memory_space<vmem>>, vector<8x128xf32>
    tpu.vector_store %arg13[%c40, %c0_20], %39 {strides = array<i32>} : memref<112x128xf32, #tpu.memory_space<vmem>>, vector<8x128xf32>,
    %41 = vector.extract_strided_slice %16 {offsets = [96, 0], sizes = [8, 128], strides = [1, 1]} : vector<224x128xf32> to vector<8x128xf32>
    %42 = vector.extract_strided_slice %16 {offsets = [104, 0], sizes = [8, 128], strides = [1, 1]} : vector<224x128xf32> to vector<8x128xf32>
    %43 = arith.maximumf %41, %42 : vector<8x128xf32>
    %c48 = arith.constant 48 : index
    %c0_21 = arith.constant 0 : index
    %44 = vector.load %arg13[%c48, %c0_21] : memref<112x128xf32, #tpu.memory_space<vmem>>, vector<8x128xf32>
    tpu.vector_store %arg13[%c48, %c0_21], %43 {strides = array<i32>} : memref<112x128xf32, #tpu.memory_space<vmem>>, vector<8x128xf32>,
    %45 = vector.extract_strided_slice %16 {offsets = [112, 0], sizes = [8, 128], strides = [1, 1]} : vector<224x128xf32> to vector<8x128xf32>
    %46 = vector.extract_strided_slice %16 {offsets = [120, 0], sizes = [8, 128], strides = [1, 1]} : vector<224x128xf32> to vector<8x128xf32>
    %47 = arith.maximumf %45, %46 : vector<8x128xf32>
    %c56 = arith.constant 56 : index
    %c0_22 = arith.constant 0 : index
    %48 = vector.load %arg13[%c56, %c0_22] : memref<112x128xf32, #tpu.memory_space<vmem>>, vector<8x128xf32>
    tpu.vector_store %arg13[%c56, %c0_22], %47 {strides = array<i32>} : memref<112x128xf32, #tpu.memory_space<vmem>>, vector<8x128xf32>,
    %49 = vector.extract_strided_slice %16 {offsets = [128, 0], sizes = [8, 128], strides = [1, 1]} : vector<224x128xf32> to vector<8x128xf32>
    %50 = vector.extract_strided_slice %16 {offsets = [136, 0], sizes = [8, 128], strides = [1, 1]} : vector<224x128xf32> to vector<8x128xf32>
    %51 = arith.maximumf %49, %50 : vector<8x128xf32>
    %c64 = arith.constant 64 : index
    %c0_23 = arith.constant 0 : index
    %52 = vector.load %arg13[%c64, %c0_23] : memref<112x128xf32, #tpu.memory_space<vmem>>, vector<8x128xf32>
    tpu.vector_store %arg13[%c64, %c0_23], %51 {strides = array<i32>} : memref<112x128xf32, #tpu.memory_space<vmem>>, vector<8x128xf32>,
    %53 = vector.extract_strided_slice %16 {offsets = [144, 0], sizes = [8, 128], strides = [1, 1]} : vector<224x128xf32> to vector<8x128xf32>
    %54 = vector.extract_strided_slice %16 {offsets = [152, 0], sizes = [8, 128], strides = [1, 1]} : vector<224x128xf32> to vector<8x128xf32>
    %55 = arith.maximumf %53, %54 : vector<8x128xf32>
    %c72 = arith.constant 72 : index
    %c0_24 = arith.constant 0 : index
    %56 = vector.load %arg13[%c72, %c0_24] : memref<112x128xf32, #tpu.memory_space<vmem>>, vector<8x128xf32>
    tpu.vector_store %arg13[%c72, %c0_24], %55 {strides = array<i32>} : memref<112x128xf32, #tpu.memory_space<vmem>>, vector<8x128xf32>,
    %57 = vector.extract_strided_slice %16 {offsets = [160, 0], sizes = [8, 128], strides = [1, 1]} : vector<224x128xf32> to vector<8x128xf32>
    %58 = vector.extract_strided_slice %16 {offsets = [168, 0], sizes = [8, 128], strides = [1, 1]} : vector<224x128xf32> to vector<8x128xf32>
    %59 = arith.maximumf %57, %58 : vector<8x128xf32>
    %c80 = arith.constant 80 : index
    %c0_25 = arith.constant 0 : index
    %60 = vector.load %arg13[%c80, %c0_25] : memref<112x128xf32, #tpu.memory_space<vmem>>, vector<8x128xf32>
    tpu.vector_store %arg13[%c80, %c0_25], %59 {strides = array<i32>} : memref<112x128xf32, #tpu.memory_space<vmem>>, vector<8x128xf32>,
    %61 = vector.extract_strided_slice %16 {offsets = [176, 0], sizes = [8, 128], strides = [1, 1]} : vector<224x128xf32> to vector<8x128xf32>
    %62 = vector.extract_strided_slice %16 {offsets = [184, 0], sizes = [8, 128], strides = [1, 1]} : vector<224x128xf32> to vector<8x128xf32>
    %63 = arith.maximumf %61, %62 : vector<8x128xf32>
    %c88 = arith.constant 88 : index
    %c0_26 = arith.constant 0 : index
    %64 = vector.load %arg13[%c88, %c0_26] : memref<112x128xf32, #tpu.memory_space<vmem>>, vector<8x128xf32>
    tpu.vector_store %arg13[%c88, %c0_26], %63 {strides = array<i32>} : memref<112x128xf32, #tpu.memory_space<vmem>>, vector<8x128xf32>,
    %65 = vector.extract_strided_slice %16 {offsets = [192, 0], sizes = [8, 128], strides = [1, 1]} : vector<224x128xf32> to vector<8x128xf32>
    %66 = vector.extract_strided_slice %16 {offsets = [200, 0], sizes = [8, 128], strides = [1, 1]} : vector<224x128xf32> to vector<8x128xf32>
    %67 = arith.maximumf %65, %66 : vector<8x128xf32>
    %c96 = arith.constant 96 : index
    %c0_27 = arith.constant 0 : index
    %68 = vector.load %arg13[%c96, %c0_27] : memref<112x128xf32, #tpu.memory_space<vmem>>, vector<8x128xf32>
    tpu.vector_store %arg13[%c96, %c0_27], %67 {strides = array<i32>} : memref<112x128xf32, #tpu.memory_space<vmem>>, vector<8x128xf32>,
    %69 = vector.extract_strided_slice %16 {offsets = [208, 0], sizes = [8, 128], strides = [1, 1]} : vector<224x128xf32> to vector<8x128xf32>
    %70 = vector.extract_strided_slice %16 {offsets = [216, 0], sizes = [8, 128], strides = [1, 1]} : vector<224x128xf32> to vector<8x128xf32>
    %71 = arith.maximumf %69, %70 : vector<8x128xf32>
    %c104 = arith.constant 104 : index
    %c0_28 = arith.constant 0 : index
    %72 = vector.load %arg13[%c104, %c0_28] : memref<112x128xf32, #tpu.memory_space<vmem>>, vector<8x128xf32>
    tpu.vector_store %arg13[%c104, %c0_28], %71 {strides = array<i32>} : memref<112x128xf32, #tpu.memory_space<vmem>>, vector<8x128xf32>,
    %c0_29 = arith.constant 0 : index
    %c0_30 = arith.constant 0 : index
    %73 = vector.load %arg13[%c0_29, %c0_30] : memref<112x128xf32, #tpu.memory_space<vmem>>, vector<80x128xf32>
    %c8_31 = arith.constant 8 : index
    %c0_32 = arith.constant 0 : index
    %74 = vector.load %arg13[%c8_31, %c0_32] : memref<112x128xf32, #tpu.memory_space<vmem>>, vector<80x128xf32>
    %c16_33 = arith.constant 16 : index
    %c0_34 = arith.constant 0 : index
    %75 = vector.load %arg13[%c16_33, %c0_34] : memref<112x128xf32, #tpu.memory_space<vmem>>, vector<80x128xf32>
    %c24_35 = arith.constant 24 : index
    %c0_36 = arith.constant 0 : index
    %76 = vector.load %arg13[%c24_35, %c0_36] : memref<112x128xf32, #tpu.memory_space<vmem>>, vector<80x128xf32>
    %c32_37 = arith.constant 32 : index
    %c0_38 = arith.constant 0 : index
    %77 = vector.load %arg13[%c32_37, %c0_38] : memref<112x128xf32, #tpu.memory_space<vmem>>, vector<80x128xf32>
    %78 = tpu.concatenate %73, %74, %75, %76, %77 in 1 : vector<80x128xf32>, vector<80x128xf32>, vector<80x128xf32>, vector<80x128xf32>, vector<80x128xf32> -> vector<80x640xf32>
    %79 = arith.truncf %78 : vector<80x640xf32> to vector<80x640xbf16>
    %c0_39 = arith.constant 0 : index
    %c0_40 = arith.constant 0 : index
    %80 = vector.load %arg4[%c0_39, %c0_40] : memref<640x256xbf16, #tpu.memory_space<vmem>>, vector<640x256xbf16>
    %cst_41 = arith.constant dense<0.000000e+00> : vector<80x256xf32>
    %81 = tpu.matmul %79, %80, %cst_41 {dimension_numbers = #tpu.dot_dimension_numbers<[1], [0], [0], [1], [0, 0, 1, 1], [], []>} : vector<80x640xbf16>, vector<640x256xbf16>, vector<80x256xf32> -> vector<80x256xf32>
    %82 = vector.extract_strided_slice %81 {offsets = [0, 0], sizes = [80, 128], strides = [1, 1]} : vector<80x256xf32> to vector<80x128xf32>
    %83 = vector.extract_strided_slice %81 {offsets = [0, 128], sizes = [80, 128], strides = [1, 1]} : vector<80x256xf32> to vector<80x128xf32>
    %84 = arith.maximumf %82, %83 : vector<80x128xf32>
    %c0_42 = arith.constant 0 : index
    %c0_43 = arith.constant 0 : index
    %85 = vector.load %arg5[%c0_42, %c0_43] : memref<1x128xf32, #tpu.memory_space<vmem>>, vector<1x128xf32>
    %86 = vector.broadcast %85 : vector<1x128xf32> to vector<80x128xf32>
    %87 = arith.addf %84, %86 : vector<80x128xf32>
    %cst_44 = arith.constant 0.000000e+00 : f32
    %88 = vector.broadcast %cst_44 : f32 to vector<80x128xf32>
    %89 = arith.maximumf %87, %88 : vector<80x128xf32>
    %90 = vector.extract_strided_slice %89 {offsets = [0, 0], sizes = [8, 128], strides = [1, 1]} : vector<80x128xf32> to vector<8x128xf32>
    %91 = vector.extract_strided_slice %89 {offsets = [8, 0], sizes = [8, 128], strides = [1, 1]} : vector<80x128xf32> to vector<8x128xf32>
    %92 = arith.maximumf %90, %91 : vector<8x128xf32>
    %93 = vector.extract_strided_slice %89 {offsets = [16, 0], sizes = [8, 128], strides = [1, 1]} : vector<80x128xf32> to vector<8x128xf32>
    %94 = vector.extract_strided_slice %89 {offsets = [24, 0], sizes = [8, 128], strides = [1, 1]} : vector<80x128xf32> to vector<8x128xf32>
    %95 = arith.maximumf %93, %94 : vector<8x128xf32>
    %96 = vector.extract_strided_slice %89 {offsets = [32, 0], sizes = [8, 128], strides = [1, 1]} : vector<80x128xf32> to vector<8x128xf32>
    %97 = vector.extract_strided_slice %89 {offsets = [40, 0], sizes = [8, 128], strides = [1, 1]} : vector<80x128xf32> to vector<8x128xf32>
    %98 = arith.maximumf %96, %97 : vector<8x128xf32>
    %99 = vector.extract_strided_slice %89 {offsets = [48, 0], sizes = [8, 128], strides = [1, 1]} : vector<80x128xf32> to vector<8x128xf32>
    %100 = vector.extract_strided_slice %89 {offsets = [56, 0], sizes = [8, 128], strides = [1, 1]} : vector<80x128xf32> to vector<8x128xf32>
    %101 = arith.maximumf %99, %100 : vector<8x128xf32>
    %102 = vector.extract_strided_slice %89 {offsets = [64, 0], sizes = [8, 128], strides = [1, 1]} : vector<80x128xf32> to vector<8x128xf32>
    %103 = vector.extract_strided_slice %89 {offsets = [72, 0], sizes = [8, 128], strides = [1, 1]} : vector<80x128xf32> to vector<8x128xf32>
    %104 = arith.maximumf %102, %103 : vector<8x128xf32>
    %105 = tpu.concatenate %92, %95, %98, %101, %104 in 1 : vector<8x128xf32>, vector<8x128xf32>, vector<8x128xf32>, vector<8x128xf32>, vector<8x128xf32> -> vector<8x640xf32>
    %106 = arith.truncf %105 : vector<8x640xf32> to vector<8x640xbf16>
    %c0_45 = arith.constant 0 : index
    %c0_46 = arith.constant 0 : index
    %107 = vector.load %arg6[%c0_45, %c0_46] : memref<640x128xbf16, #tpu.memory_space<vmem>>, vector<640x128xbf16>
    %cst_47 = arith.constant dense<0.000000e+00> : vector<8x128xf32>
    %108 = tpu.matmul %106, %107, %cst_47 {dimension_numbers = #tpu.dot_dimension_numbers<[1], [0], [0], [1], [0, 0, 1, 1], [], []>} : vector<8x640xbf16>, vector<640x128xbf16>, vector<8x128xf32> -> vector<8x128xf32>
    %c0_48 = arith.constant 0 : index
    %c0_49 = arith.constant 0 : index
    %109 = vector.load %arg7[%c0_48, %c0_49] : memref<1x128xf32, #tpu.memory_space<vmem>>, vector<1x128xf32>
    %110 = vector.broadcast %109 : vector<1x128xf32> to vector<8x128xf32>
    %111 = arith.addf %108, %110 : vector<8x128xf32>
    %cst_50 = arith.constant 0.000000e+00 : f32
    %112 = vector.broadcast %cst_50 : f32 to vector<8x128xf32>
    %113 = arith.maximumf %111, %112 : vector<8x128xf32>
    %114 = arith.truncf %113 : vector<8x128xf32> to vector<8x128xbf16>
    %c0_51 = arith.constant 0 : index
    %c0_52 = arith.constant 0 : index
    %115 = vector.load %arg8[%c0_51, %c0_52] : memref<128x128xbf16, #tpu.memory_space<vmem>>, vector<128x128xbf16>
    %cst_53 = arith.constant dense<0.000000e+00> : vector<8x128xf32>
    %116 = tpu.matmul %114, %115, %cst_53 {dimension_numbers = #tpu.dot_dimension_numbers<[1], [0], [0], [1], [0, 0, 1, 1], [], []>} : vector<8x128xbf16>, vector<128x128xbf16>, vector<8x128xf32> -> vector<8x128xf32>
    %c0_54 = arith.constant 0 : index
    %c0_55 = arith.constant 0 : index
    %117 = vector.load %arg9[%c0_54, %c0_55] : memref<1x128xf32, #tpu.memory_space<vmem>>, vector<1x128xf32>
    %118 = vector.broadcast %117 : vector<1x128xf32> to vector<8x128xf32>
    %119 = arith.addf %116, %118 : vector<8x128xf32>
    %cst_56 = arith.constant 0.000000e+00 : f32
    %120 = vector.broadcast %cst_56 : f32 to vector<8x128xf32>
    %121 = arith.maximumf %119, %120 : vector<8x128xf32>
    %122 = arith.truncf %121 : vector<8x128xf32> to vector<8x128xbf16>
    %c0_57 = arith.constant 0 : index
    %c0_58 = arith.constant 0 : index
    %123 = vector.load %arg10[%c0_57, %c0_58] : memref<128x10xbf16, #tpu.memory_space<vmem>>, vector<128x10xbf16>
    %cst_59 = arith.constant dense<0.000000e+00> : vector<8x10xf32>
    %124 = tpu.matmul %122, %123, %cst_59 {dimension_numbers = #tpu.dot_dimension_numbers<[1], [0], [0], [1], [0, 0, 1, 1], [], []>} : vector<8x128xbf16>, vector<128x10xbf16>, vector<8x10xf32> -> vector<8x10xf32>
    %c0_60 = arith.constant 0 : index
    %c0_61 = arith.constant 0 : index
    %125 = vector.load %arg11[%c0_60, %c0_61] : memref<1x10xf32, #tpu.memory_space<vmem>>, vector<1x10xf32>
    %126 = vector.broadcast %125 : vector<1x10xf32> to vector<8x10xf32>
    %127 = arith.addf %124, %126 : vector<8x10xf32>
    %c0_62 = arith.constant 0 : index
    %c0_63 = arith.constant 0 : index
    %128 = vector.load %arg12[%c0_62, %c0_63] : memref<8x10xf32, #tpu.memory_space<vmem>>, vector<8x10xf32>
    tpu.vector_store %arg12[%c0_62, %c0_63], %127 {strides = array<i32>} : memref<8x10xf32, #tpu.memory_space<vmem>>, vector<8x10xf32>,
    return
  }
  func.func @transform_0(%arg0: i32) -> (i32, i32) {
    %c0_i32 = arith.constant 0 : i32
    %c0_i32_0 = arith.constant 0 : i32
    return %arg0, %c0_i32 : i32, i32
  }
  func.func @transform_1(%arg0: i32) -> (i32, i32) {
    %c0_i32 = arith.constant 0 : i32
    %c0_i32_0 = arith.constant 0 : i32
    %c0_i32_1 = arith.constant 0 : i32
    return %c0_i32, %c0_i32_0 : i32, i32
  }
  func.func @transform_2(%arg0: i32) -> (i32, i32) {
    %c0_i32 = arith.constant 0 : i32
    %c0_i32_0 = arith.constant 0 : i32
    %c0_i32_1 = arith.constant 0 : i32
    return %c0_i32, %c0_i32_0 : i32, i32
  }
  func.func @transform_3(%arg0: i32) -> (i32, i32) {
    %c0_i32 = arith.constant 0 : i32
    %c0_i32_0 = arith.constant 0 : i32
    %c0_i32_1 = arith.constant 0 : i32
    return %c0_i32, %c0_i32_0 : i32, i32
  }
  func.func @transform_4(%arg0: i32) -> (i32, i32) {
    %c0_i32 = arith.constant 0 : i32
    %c0_i32_0 = arith.constant 0 : i32
    %c0_i32_1 = arith.constant 0 : i32
    return %c0_i32, %c0_i32_0 : i32, i32
  }
  func.func @transform_5(%arg0: i32) -> (i32, i32) {
    %c0_i32 = arith.constant 0 : i32
    %c0_i32_0 = arith.constant 0 : i32
    %c0_i32_1 = arith.constant 0 : i32
    return %c0_i32, %c0_i32_0 : i32, i32
  }
  func.func @transform_6(%arg0: i32) -> (i32, i32) {
    %c0_i32 = arith.constant 0 : i32
    %c0_i32_0 = arith.constant 0 : i32
    %c0_i32_1 = arith.constant 0 : i32
    return %c0_i32, %c0_i32_0 : i32, i32
  }
  func.func @transform_7(%arg0: i32) -> (i32, i32) {
    %c0_i32 = arith.constant 0 : i32
    %c0_i32_0 = arith.constant 0 : i32
    %c0_i32_1 = arith.constant 0 : i32
    return %c0_i32, %c0_i32_0 : i32, i32
  }
  func.func @transform_8(%arg0: i32) -> (i32, i32) {
    %c0_i32 = arith.constant 0 : i32
    %c0_i32_0 = arith.constant 0 : i32
    %c0_i32_1 = arith.constant 0 : i32
    return %c0_i32, %c0_i32_0 : i32, i32
  }
  func.func @transform_9(%arg0: i32) -> (i32, i32) {
    %c0_i32 = arith.constant 0 : i32
    %c0_i32_0 = arith.constant 0 : i32
    %c0_i32_1 = arith.constant 0 : i32
    return %c0_i32, %c0_i32_0 : i32, i32
  }
  func.func @transform_10(%arg0: i32) -> (i32, i32) {
    %c0_i32 = arith.constant 0 : i32
    %c0_i32_0 = arith.constant 0 : i32
    %c0_i32_1 = arith.constant 0 : i32
    return %c0_i32, %c0_i32_0 : i32, i32
  }
  func.func @transform_11(%arg0: i32) -> (i32, i32) {
    %c0_i32 = arith.constant 0 : i32
    %c0_i32_0 = arith.constant 0 : i32
    return %arg0, %c0_i32 : i32, i32
  }
}

</mosaic_0001>

<bundles_post_ra>
// kernel: net_forward.1
= control target key start
LH: loop header
LB: loop body
LE: loop exit
PB: predicated region body
PF: predicated region fallthrough
CT: control target
= control target key end

     0   :  { %16 = vsyncpa [#allocation4], 0  ;;  %s3226_s17 = smov [#allocation3]   ;;  %s4192_s0 = inlined_call_operand.vmem [shape: f32[256,32], index: 0, kind: input, shape index: {}]   ;;  %s4193_s1 = inlined_call_operand.vmem [shape: bf16[160,256], index: 1, kind: input, shape index: {}]   ;;  %s4194_s2 = inlined_call_operand.vmem [shape: f32[1,128], index: 2, kind: input, shape index: {}]   ;;  %s4195_s3 = inlined_call_operand.vmem [shape: bf16[640,256], index: 3, kind: input, shape index: {}]   ;;  %s4196_s4 = inlined_call_operand.vmem [shape: f32[1,128], index: 4, kind: input, shape index: {}]   ;;  %s4197_s5 = inlined_call_operand.hbm [shape: bf16[640,128], index: 5, kind: input, shape index: {}]   ;;  %s4198_s6 = inlined_call_operand.vmem [shape: f32[1,128], index: 6, kind: input, shape index: {}]   ;;  %s4199_s7 = inlined_call_operand.vmem [shape: bf16[128,128], index: 7, kind: input, shape index: {}]   ;;  %s4200_s8 = inlined_call_operand.vmem [shape: f32[1,128], index: 8, kind: input, shape index: {}]   ;;  %s4201_s9 = inlined_call_operand.vmem [shape: bf16[128,10], index: 9, kind: input, shape index: {}]   ;;  %s4202_s10 = inlined_call_operand.vmem [shape: f32[1,10], index: 10, kind: input, shape index: {}]   ;;  %s4203_s11 = inlined_call_operand.vmem [shape: f32[8,10], index: 11, kind: output, shape index: {}]  }
   0x1   :  { %s32_s18 = sshll.u32 %s3226_s17, 4  ;;  %s3202_s21 = scalar_lea.hbm %s4197_s5, 5120  ;;  %s33_s18 = int_to_ptr.vmem [resolvable:$true] %s32_s18 }
   0x2   :  { %p3203_p0 = scmp.ne.s32.totalorder %s4197_s5, %s3202_s21  ;;  %p3206_p1 = scmp.lt.u32.totalorder %s3202_s21, %s4197_s5 }
   0x4   :  { %p3208_p2 = pnand %p3206_p1, %p3203_p0 }
   0x6   :  { %3211 = shalt.err (!%p3208_p2)
}
   0x7   :  { %s3212_s26 = scalar_lea.vmem %s33_s18, 5120  ;;  %p3217_p4 = scmp.lt.s32.totalorder %s33_s18, %s33_s18 }
   0x8   :  { %p3213_p3 = scmp.ne.s32.totalorder %s33_s18, %s3212_s26  ;;  %p3218_p5 = scmp.lt.s32.totalorder %s3212_s26, %s3212_s26 }
   0xa   :  { %p3219_p6 = por %p3218_p5, %p3217_p4 }
   0xc   :  { %p3220_p7 = pnand %p3219_p6, %p3213_p3 }
   0xe   :  { %3223 = shalt.err (!%p3220_p7)
}
   0xf   :  { %s3227_s27 = smov 64   ;;  %s3228_s28 = smov 4  }
  0x10   :  { %38 = dma.hbm_to_vmem [thread:$0]  %s4197_s5, 5120, %s33_s18, [#allocation4], %s3227_s27, %s3227_s27, %s3228_s28  }
  0x11   :  { %3224 = dma.done.wait [#allocation4], 5120  }
  0x12   :  { %3225 = vsyncadd [#allocation4], 4294962176  ;;  %v3311_v0 = vld [vmem:[%s4192_s0 + $0x8] sm:$0xff]  ;;  %v3316_v1 = vld [vmem:[%s4192_s0 + $0x10] sm:$0xff]  ;;  %s3229_s19 = smov 32   ;;  %s3230_s20 = smov 96  }
  0x13   :  { %v3321_v2 = vld [vmem:[%s4192_s0 + $0x18] sm:$0xff]  ;;  %v2786_v3 = vpack.i.bf16 %v3316_v1, %v3311_v0  ;;  %v3328_v4 = vld [vmem:[%s4192_s0 + $0x20] sm:$0xff]  ;;  %v3339_v7 = vld [vmem:[%s4192_s0 + $0x28] sm:$0xff]  ;;  %vm367_vm0 = vcmask 261120   ;;  %vm396_vm1 = vcmask 523264   ;;  %vm425_vm2 = vcmask 785408  }
  0x14   :  { %v2796_v5 = vpack.i.bf16 %v3328_v4, %v3321_v2  ;;  %v2791_v6 = vpack.i.bf16 %v3321_v2, %v3316_v1  ;;  %v3344_v8 = vld [vmem:[%s4192_s0 + $0x30] sm:$0xff]  ;;  %v2806_v9 = vpack.i.bf16 %v3339_v7, %v3328_v4  ;;  %v3352_v10 = vld [vmem:[%s4192_s0 + $0x38] sm:$0xff]  ;;  %v2996_v12 = vld [vmem:[%s4193_s1 + $0x4] ss:$8 sps:$4 sm:$0xff]   ;;  %v455_v15 = vpack.c.bf16 %v3339_v7, %v3328_v4 }
  0x15   :  { %2787 = vrot.lane.b32.xlu0 %v2786_v3, %s3229_s19  ;;  %v2811_v11 = vpack.i.bf16 %v3344_v8, %v3339_v7  ;;  %v2998_v13 = vld [vmem:[%s4193_s1] ss:$8 sps:$4 sm:$0xff]   ;;  %644 = vmatprep.subr.bf16.mxu0 %v2996_v12  ;;  %v2999_v14 = vld [vmem:[%s4193_s1 + $0x14] ss:$8 sps:$4 sm:$0xff]   ;;  %v3001_v16 = vld [vmem:[%s4193_s1 + $0x10] ss:$8 sps:$4 sm:$0xff]   ;;  %v2821_v17 = vpack.i.bf16 %v3352_v10, %v3344_v8 }
  0x16   :  { %2797 = vrot.lane.b32.xlu1 %v2796_v5, %s3230_s20  ;;  %645 = vmatpush1.bf16.msra.mxu0 %v2998_v13  ;;  %v3378_v18 = vld [vmem:[%s4192_s0 + $0x40] sm:$0xff]  ;;  %v3394_v22 = vld [vmem:[%s4192_s0 + $0x48] sm:$0xff]  ;;  %v3005_v23 = vld [vmem:[%s4193_s1 + $0x34] ss:$8 sps:$4 sm:$0xff]   ;;  %vm3233_vm3 = vmmov 0   ;;  %vm2425_vm4 = vcmask 80896  }
  0x17   :  { %646 = vmatprep.subr.bf16.mxu0 %v2999_v14  ;;  %v3002_v19 = vld [vmem:[%s4193_s1 + $0x24] ss:$8 sps:$4 sm:$0xff]   ;;  %2452 = vmatprep.mubr.msk.bf16.mxu0 %vm367_vm0, %v455_v15  ;;  %v2826_v20 = vpack.i.bf16 %v3378_v18, %v3352_v10  ;;  %v3004_v21 = vld [vmem:[%s4193_s1 + $0x20] ss:$8 sps:$4 sm:$0xff]   ;;  %v3402_v24 = vld [vmem:[%s4192_s0 + $0x50] sm:$0xff]  ;;  %v2836_v25 = vpack.i.bf16 %v3394_v22, %v3378_v18 }
  0x18   :  { %v3007_v26 = vld [vmem:[%s4193_s1 + $0x30] ss:$8 sps:$4 sm:$0xff]   ;;  %v2841_v27 = vpack.i.bf16 %v3402_v24, %v3394_v22  ;;  %v3008_v28 = vld [vmem:[%s4193_s1 + $0x44] ss:$8 sps:$4 sm:$0xff]   ;;  %v3010_v34 = vld [vmem:[%s4193_s1 + $0x40] ss:$8 sps:$4 sm:$0xff]  }
  0x19   :  { %2792 = vrot.lane.b32.xlu0 %v2791_v6, %s3227_s27  ;;  %v3419_v29 = vld [vmem:[%s4192_s0 + $0x58] sm:$0xff]  ;;  %v3424_v30 = vld [vmem:[%s4192_s0 + $0xe0] sm:$0xff]  ;;  %v3429_v31 = vld [vmem:[%s4192_s0 + $0xe8] sm:$0xff] }
  0x1a   :  { %2802 = vrot.lane.b32.xlu1 %v2796_v5, %s3229_s19  ;;  %647 = vmatpush1.bf16.msra.mxu0 %v3001_v16  ;;  %v3434_v32 = vld [vmem:[%s4192_s0 + $0x60] sm:$0xff]  ;;  %v479_v33 = vpack.c.bf16 %v3429_v31, %v3424_v30  ;;  %v3011_v35 = vld [vmem:[%s4193_s1 + $0x54] ss:$8 sps:$4 sm:$0xff]   ;;  %v2851_v36 = vpack.i.bf16 %v3419_v29, %v3402_v24  ;;  %v3013_v37 = vld [vmem:[%s4193_s1 + $0x50] ss:$8 sps:$4 sm:$0xff]  }
  0x1b   :  { %648 = vmatprep.subr.bf16.mxu0 %v3002_v19  ;;  %v3454_v38 = vld [vmem:[%s4192_s0 + $0x68] sm:$0xff]  ;;  %v2856_v40 = vpack.i.bf16 %v3434_v32, %v3419_v29  ;;  %v3465_v41 = vld [vmem:[%s4192_s0 + $0x70] sm:$0xff]  ;;  %v3480_v45 = vld [vmem:[%s4192_s0 + $0x78] sm:$0xff] }
  0x1c   :  { %v3014_v39 = vld [vmem:[%s4193_s1 + $0x64] ss:$8 sps:$4 sm:$0xff]   ;;  %v3016_v42 = vld [vmem:[%s4193_s1 + $0x60] ss:$8 sps:$4 sm:$0xff]   ;;  %v3017_v43 = vld [vmem:[%s4193_s1 + $0x74] ss:$8 sps:$4 sm:$0xff]   ;;  %v2866_v44 = vpack.i.bf16 %v3454_v38, %v3434_v32  ;;  %v2871_v46 = vpack.i.bf16 %v3465_v41, %v3454_v38  ;;  %v2881_v50 = vpack.i.bf16 %v3480_v45, %v3465_v41 }
  0x1d   :  { %2807 = vrot.lane.b32.xlu0 %v2806_v9, %s3227_s27  ;;  %v3019_v47 = vld [vmem:[%s4193_s1 + $0x70] ss:$8 sps:$4 sm:$0xff]   ;;  %v3491_v48 = vld [vmem:[%s4192_s0 + $0x80] sm:$0xff]  ;;  %v3506_v52 = vld [vmem:[%s4192_s0 + $0x88] sm:$0xff] }
  0x1e   :  { %2812 = vrot.lane.b32.xlu1 %v2811_v11, %s3230_s20  ;;  %649 = vmatpush1.bf16.msra.mxu0 %v3004_v21  ;;  %v3020_v49 = vld [vmem:[%s4193_s1 + $0x84] ss:$8 sps:$4 sm:$0xff]   ;;  %v3022_v51 = vld [vmem:[%s4193_s1 + $0x80] ss:$8 sps:$4 sm:$0xff]   ;;  %v3023_v53 = vld [vmem:[%s4193_s1 + $0x94] ss:$8 sps:$4 sm:$0xff]   ;;  %v2886_v54 = vpack.i.bf16 %v3491_v48, %v3480_v45  ;;  %v2896_v57 = vpack.i.bf16 %v3506_v52, %v3491_v48 }
  0x1f   :  { %650 = vmatprep.subr.bf16.mxu0 %v3005_v23  ;;  %v3517_v55 = vld [vmem:[%s4192_s0 + $0x90] sm:$0xff]  ;;  %v3529_v58 = vld [vmem:[%s4192_s0 + $0x98] sm:$0xff]  ;;  %v3537_v60 = vld [vmem:[%s4192_s0 + $0xa0] sm:$0xff] }
  0x20   :  { %v3025_v56 = vld [vmem:[%s4193_s1 + $0x90] ss:$8 sps:$4 sm:$0xff]   ;;  %v2901_v59 = vpack.i.bf16 %v3517_v55, %v3506_v52  ;;  %v2911_v61 = vpack.i.bf16 %v3529_v58, %v3517_v55  ;;  %v3546_v62 = vld [vmem:[%s4192_s0 + $0xa8] sm:$0xff]  ;;  %v2916_v63 = vpack.i.bf16 %v3537_v60, %v3529_v58 }
  0x21   :  { %2817 = vrot.lane.b32.xlu0 %v2811_v11, %s3229_s19  ;;  %v3554_v3 = vld [vmem:[%s4192_s0 + $0xb0] sm:$0xff]  ;;  %v2926_v5 = vpack.i.bf16 %v3546_v62, %v3537_v60  ;;  %v3563_v6 = vld [vmem:[%s4192_s0 + $0xb8] sm:$0xff]  ;;  %v3571_v11 = vld [vmem:[%s4192_s0 + $0xc0] sm:$0xff] }
  0x22   :  { %2822 = vrot.lane.b32.xlu1 %v2821_v17, %s3227_s27  ;;  %651 = vmatpush1.bf16.msra.mxu0 %v3007_v26  ;;  %v2931_v9 = vpack.i.bf16 %v3554_v3, %v3546_v62  ;;  %v2941_v12 = vpack.i.bf16 %v3563_v6, %v3554_v3  ;;  %v3580_v13 = vld [vmem:[%s4192_s0 + $0xc8] sm:$0xff]  ;;  %v2946_v14 = vpack.i.bf16 %v3571_v11, %v3563_v6  ;;  %v3588_v15 = vld [vmem:[%s4192_s0 + $0xd0] sm:$0xff]  ;;  %v3597_v17 = vld [vmem:[%s4192_s0 + $0xd8] sm:$0xff] }
  0x23   :  { %652 = vmatprep.subr.bf16.mxu0 %v3008_v28  ;;  %v2956_v16 = vpack.i.bf16 %v3580_v13, %v3571_v11  ;;  %v2961_v19 = vpack.i.bf16 %v3588_v15, %v3580_v13  ;;  %v2976_v21 = vpack.i.bf16 %v3424_v30, %v3597_v17  ;;  %v3612_v23 = vld [vmem:[%s4192_s0 + $0xf0] sm:$0xff]  ;;  %v3028_v28 = vld [vmem:[%s4195_s3] ss:$8 sps:$4 sm:$0xff]  }
  0x24   :  { %v2991_v26 = vpack.i.bf16 %v3612_v23, %v3429_v31 }
  0x25   :  { %2827 = vrot.lane.b32.xlu0 %v2826_v20, %s3230_s20 }
  0x26   :  { %2832 = vrot.lane.b32.xlu1 %v2826_v20, %s3229_s19  ;;  %653 = vmatpush1.bf16.msra.mxu0 %v3010_v34  ;;  %v2971_v20 = vpack.i.bf16 %v3597_v17, %v3588_v15  ;;  %v3029_v34 = vld [vmem:[%s4195_s3 + $0x14] ss:$8 sps:$4 sm:$0xff]  }
  0x27   :  { %654 = vmatprep.subr.bf16.mxu0 %v3011_v35  ;;  %v3031_v35 = vld [vmem:[%s4195_s3 + $0x10] ss:$8 sps:$4 sm:$0xff]  }
  0x29   :  { %2837 = vrot.lane.b32.xlu0 %v2836_v25, %s3227_s27  ;;  %v2986_v25 = vpack.i.bf16 %v3429_v31, %v3424_v30 }
  0x2a   :  { %2842 = vrot.lane.b32.xlu1 %v2841_v27, %s3230_s20  ;;  %655 = vmatpush1.bf16.msra.mxu0 %v3013_v37  ;;  %v3034_v37 = vld [vmem:[%s4195_s3 + $0x20] ss:$8 sps:$4 sm:$0xff]  }
  0x2b   :  { %656 = vmatprep.subr.bf16.mxu0 %v3014_v39  ;;  %v3035_v39 = vld [vmem:[%s4195_s3 + $0x34] ss:$8 sps:$4 sm:$0xff]  }
  0x2d   :  { %2847 = vrot.lane.b32.xlu0 %v2841_v27, %s3229_s19  ;;  %v3026_v27 = vld [vmem:[%s4195_s3 + $0x4] ss:$8 sps:$4 sm:$0xff]  }
  0x2e   :  { %2852 = vrot.lane.b32.xlu1 %v2851_v36, %s3227_s27  ;;  %657 = vmatpush1.bf16.msra.mxu0 %v3016_v42  ;;  %v3032_v36 = vld [vmem:[%s4195_s3 + $0x24] ss:$8 sps:$4 sm:$0xff]  }
  0x2f   :  { %658 = vmatprep.subr.bf16.mxu0 %v3017_v43  ;;  %1456 = vmatprep.subr.bf16.mxu1 %v3026_v27  ;;  %v3038_v42 = vld [vmem:[%s4195_s3 + $0x44] ss:$8 sps:$4 sm:$0xff]  }
  0x30   :  { %1457 = vmatpush1.bf16.msra.mxu1 %v3028_v28 }
  0x31   :  { %2857 = vrot.lane.b32.xlu0 %v2856_v40, %s3230_s20  ;;  %1458 = vmatprep.subr.bf16.mxu1 %v3029_v34 }
  0x32   :  { %2862 = vrot.lane.b32.xlu1 %v2856_v40, %s3229_s19  ;;  %659 = vmatpush1.bf16.msra.mxu0 %v3019_v47  ;;  %v3037_v40 = vld [vmem:[%s4195_s3 + $0x30] ss:$8 sps:$4 sm:$0xff]  }
  0x33   :  { %660 = vmatprep.subr.bf16.mxu0 %v3020_v49  ;;  %v3040_v49 = vld [vmem:[%s4195_s3 + $0x40] ss:$8 sps:$4 sm:$0xff]  }
  0x34   :  { %1459 = vmatpush1.bf16.msra.mxu1 %v3031_v35 }
  0x35   :  { %2867 = vrot.lane.b32.xlu0 %v2866_v44, %s3227_s27  ;;  %1460 = vmatprep.subr.bf16.mxu1 %v3032_v36 }
  0x36   :  { %2872 = vrot.lane.b32.xlu1 %v2871_v46, %s3230_s20  ;;  %661 = vmatpush1.bf16.msra.mxu0 %v3022_v51  ;;  %v3041_v51 = vld [vmem:[%s4195_s3 + $0x54] ss:$8 sps:$4 sm:$0xff]  }
  0x37   :  { %662 = vmatprep.subr.bf16.mxu0 %v3023_v53 }
  0x38   :  { %1461 = vmatpush1.bf16.msra.mxu1 %v3034_v37 }
  0x39   :  { %2877 = vrot.lane.b32.xlu0 %v2871_v46, %s3229_s19  ;;  %1462 = vmatprep.subr.bf16.mxu1 %v3035_v39 }
  0x3a   :  { %2882 = vrot.lane.b32.xlu1 %v2881_v50, %s3227_s27  ;;  %663 = vmatpush1.bf16.msra.mxu0 %v3025_v56  ;;  %v53_v50 = vld [vmem:[%s4192_s0] sm:$0xff] }
  0x3c   :  { %1463 = vmatpush1.bf16.msra.mxu1 %v3037_v40 }
  0x3d   :  { %2887 = vrot.lane.b32.xlu0 %v2886_v54, %s3230_s20  ;;  %1464 = vmatprep.subr.bf16.mxu1 %v3038_v42  ;;  %v3046_v42 = vld [vmem:[%s4195_s3 + $0x60] ss:$8 sps:$4 sm:$0xff]  }
  0x3e   :  { %2892 = vrot.lane.b32.xlu1 %v2886_v54, %s3229_s19 }
  0x40   :  { %1465 = vmatpush1.bf16.msra.mxu1 %v3040_v49 }
  0x41   :  { %2897 = vrot.lane.b32.xlu0 %v2896_v57, %s3227_s27  ;;  %1466 = vmatprep.subr.bf16.mxu1 %v3041_v51 }
  0x42   :  { %2902 = vrot.lane.b32.xlu1 %v2901_v59, %s3230_s20 }
  0x45   :  { %2907 = vrot.lane.b32.xlu0 %v2901_v59, %s3229_s19 }
  0x46   :  { %2912 = vrot.lane.b32.xlu1 %v2911_v61, %s3227_s27 }
  0x49   :  { %2917 = vrot.lane.b32.xlu0 %v2916_v63, %s3230_s20 }
  0x4a   :  { %2922 = vrot.lane.b32.xlu1 %v2916_v63, %s3229_s19 }
  0x4d   :  { %2927 = vrot.lane.b32.xlu0 %v2926_v5, %s3227_s27 }
  0x4e   :  { %2932 = vrot.lane.b32.xlu1 %v2931_v9, %s3230_s20 }
  0x51   :  { %2937 = vrot.lane.b32.xlu0 %v2931_v9, %s3229_s19 }
  0x52   :  { %2942 = vrot.lane.b32.xlu1 %v2941_v12, %s3227_s27 }
  0x55   :  { %2947 = vrot.lane.b32.xlu0 %v2946_v14, %s3230_s20 }
  0x56   :  { %2952 = vrot.lane.b32.xlu1 %v2946_v14, %s3229_s19  ;;  %v3043_v14 = vld [vmem:[%s4195_s3 + $0x50] ss:$8 sps:$4 sm:$0xff]  }
  0x57   :  { %1467 = vmatpush1.bf16.msra.mxu1 %v3043_v14 }
  0x59   :  { %2957 = vrot.lane.b32.xlu0 %v2956_v16, %s3227_s27 }
  0x5a   :  { %2962 = vrot.lane.b32.xlu1 %v2961_v19, %s3230_s20 }
  0x5d   :  { %2967 = vrot.lane.b32.xlu0 %v2961_v19, %s3229_s19 }
  0x5e   :  { %2972 = vrot.lane.b32.xlu1 %v2971_v20, %s3227_s27  ;;  %v457_v20 = vpack.c.bf16 %v3352_v10, %v3344_v8 }
  0x61   :  { %2977 = vrot.lane.b32.xlu0 %v2976_v21, %s3230_s20 }
  0x62   :  { %2982 = vrot.lane.b32.xlu1 %v2976_v21, %s3229_s19 }
  0x65   :  { %2987 = vrot.lane.b32.xlu0 %v2986_v25, %s3227_s27 }
  0x66   :  { %2992 = vrot.lane.b32.xlu1 %v2991_v26, %s3230_s20 }
  0x87   :  { %v2788_v43 = vpop.permute.xlu0 %2787 }
  0x88   :  { %v2798_v44 = vpop.permute.xlu1 %2797  ;;  %v2790_v46 = vunpack.i.h.bf16 %v2788_v43  ;;  %v2789_v47 = vunpack.i.l.bf16 %v2788_v43  ;;  %v3047_v43 = vld [vmem:[%s4195_s3 + $0x74] ss:$8 sps:$4 sm:$0xff]  }
  0x89   :  { %v2800_v53 = vunpack.i.h.bf16 %v2798_v44  ;;  %v2799_v54 = vunpack.i.l.bf16 %v2798_v44 }
  0x8a   :  { %v369_v63 = vsel %vm367_vm0, %v3311_v0, %v2790_v46  ;;  %v368_v5 = vsel %vm367_vm0, %v53_v50, %v2789_v47  ;;  %v3044_v0 = vld [vmem:[%s4195_s3 + $0x64] ss:$8 sps:$4 sm:$0xff]  }
  0x8b   :  { %v2793_v56 = vpop.permute.xlu0 %2792  ;;  %1468 = vmatprep.subr.bf16.mxu1 %v3044_v0 }
  0x8c   :  { %v2795_v57 = vunpack.i.h.bf16 %v2793_v56  ;;  %v2794_v59 = vunpack.i.l.bf16 %v2793_v56  ;;  %v2803_v61 = vpop.permute.xlu1 %2802  ;;  %1469 = vmatpush1.bf16.msra.mxu1 %v3046_v42 }
  0x8d   :  { %v2805_v9 = vunpack.i.h.bf16 %v2803_v61  ;;  %v2804_v12 = vunpack.i.l.bf16 %v2803_v61  ;;  %1470 = vmatprep.subr.bf16.mxu1 %v3047_v43 }
  0x8e   :  { %v397_v16 = vsel %vm396_vm1, %v368_v5, %v2794_v59  ;;  %v398_v19 = vsel %vm396_vm1, %v369_v63, %v2795_v57  ;;  %v3050_v57 = vld [vmem:[%s4195_s3 + $0x84] ss:$8 sps:$4 sm:$0xff]   ;;  %v459_v5 = vpack.c.bf16 %v3394_v22, %v3378_v18 }
  0x8f   :  { %v371_v21 = vsel %vm367_vm0, %v3321_v2, %v2805_v9  ;;  %v370_v25 = vsel %vm367_vm0, %v3316_v1, %v2804_v12  ;;  %v2808_v26 = vpop.permute.xlu0 %2807  ;;  %v426_v27 = vsel %vm425_vm2, %v397_v16, %v2799_v54  ;;  %v427_v28 = vsel %vm425_vm2, %v398_v19, %v2800_v53  ;;  %v3049_v53 = vld [vmem:[%s4195_s3 + $0x70] ss:$8 sps:$4 sm:$0xff]  }
  0x90   :  { %v2810_v34 = vunpack.i.h.bf16 %v2808_v26  ;;  %v2809_v35 = vunpack.i.l.bf16 %v2808_v26  ;;  %v2813_v36 = vpop.permute.xlu1 %2812  ;;  %v454_v37 = vpack.c.bf16 %v427_v28, %v426_v27  ;;  %1471 = vmatpush1.bf16.msra.mxu1 %v3049_v53 }
  0x91   :  { %v2815_v39 = vunpack.i.h.bf16 %v2813_v36  ;;  %v2814_v40 = vunpack.i.l.bf16 %v2813_v36  ;;  %1472 = vmatprep.subr.bf16.mxu1 %v3050_v57 }
  0x92   :  { %v400_v2 = vsel %vm396_vm1, %v371_v21, %v2810_v34  ;;  %v399_v1 = vsel %vm396_vm1, %v370_v25, %v2809_v35  ;;  %677 = vmatmul.mubr.bf16.vlgmr.msra.gmra.mrb[0].mxu0 %v454_v37  ;;  %v461_v37 = vpack.c.bf16 %v3419_v29, %v3402_v24 }
  0x93   :  { %v2818_v44 = vpop.permute.xlu0 %2817  ;;  %2453 = vmatprep.mubr.msk.bf16.mxu0 %vm367_vm0, %v457_v20  ;;  %v428_v50 = vsel %vm425_vm2, %v399_v1, %v2814_v40  ;;  %v429_v51 = vsel %vm425_vm2, %v400_v2, %v2815_v39 }
  0x94   :  { %v2820_v46 = vunpack.i.h.bf16 %v2818_v44  ;;  %v2819_v47 = vunpack.i.l.bf16 %v2818_v44  ;;  %v2823_v49 = vpop.permute.xlu1 %2822  ;;  %v456_v9 = vpack.c.bf16 %v429_v51, %v428_v50 }
  0x95   :  { %v2825_v54 = vunpack.i.h.bf16 %v2823_v49  ;;  %v2824_v56 = vunpack.i.l.bf16 %v2823_v49 }
  0x96   :  { %v373_v59 = vsel %vm367_vm0, %v3339_v7, %v2820_v46  ;;  %v372_v61 = vsel %vm367_vm0, %v3328_v4, %v2819_v47 }
  0x97   :  { %v2828_v63 = vpop.permute.xlu0 %2827  ;;  %v401_v19 = vsel %vm396_vm1, %v372_v61, %v2824_v56  ;;  %v402_v20 = vsel %vm396_vm1, %v373_v59, %v2825_v54  ;;  %v463_v54 = vpack.c.bf16 %v3454_v38, %v3434_v32 }
  0x98   :  { %v2833_v12 = vpop.permute.xlu1 %2832  ;;  %v2830_v14 = vunpack.i.h.bf16 %v2828_v63  ;;  %v2829_v16 = vunpack.i.l.bf16 %v2828_v63 }
  0x99   :  { %v2835_v0 = vunpack.i.h.bf16 %v2833_v12  ;;  %v2834_v7 = vunpack.i.l.bf16 %v2833_v12 }
  0x9a   :  { %687 = vmatmul.mubr.bf16.gmra.mrb[4].mxu0 %v456_v9  ;;  %v430_v4 = vsel %vm425_vm2, %v401_v19, %v2829_v16  ;;  %v431_v25 = vsel %vm425_vm2, %v402_v20, %v2830_v14 }
  0x9b   :  { %v2838_v21 = vpop.permute.xlu0 %2837  ;;  %2454 = vmatprep.mubr.msk.bf16.mxu0 %vm367_vm0, %v459_v5  ;;  %v375_v34 = vsel %vm367_vm0, %v3352_v10, %v2835_v0  ;;  %v374_v35 = vsel %vm367_vm0, %v3344_v8, %v2834_v7  ;;  %v458_v39 = vpack.c.bf16 %v431_v25, %v430_v4  ;;  %v465_v4 = vpack.c.bf16 %v3480_v45, %v3465_v41 }
  0x9c   :  { %v2840_v26 = vunpack.i.h.bf16 %v2838_v21  ;;  %v2839_v27 = vunpack.i.l.bf16 %v2838_v21  ;;  %v2843_v28 = vpop.permute.xlu1 %2842 }
  0x9d   :  { %v2845_v40 = vunpack.i.h.bf16 %v2843_v28  ;;  %v2844_v42 = vunpack.i.l.bf16 %v2843_v28 }
  0x9e   :  { %v404_v2 = vsel %vm396_vm1, %v375_v34, %v2840_v26  ;;  %v403_v1 = vsel %vm396_vm1, %v374_v35, %v2839_v27 }
  0x9f   :  { %v2848_v36 = vpop.permute.xlu0 %2847  ;;  %v432_v8 = vsel %vm425_vm2, %v403_v1, %v2844_v42  ;;  %v433_v47 = vsel %vm425_vm2, %v404_v2, %v2845_v40 }
  0xa0   :  { %v2853_v43 = vpop.permute.xlu1 %2852  ;;  %v2850_v44 = vunpack.i.h.bf16 %v2848_v36  ;;  %v2849_v46 = vunpack.i.l.bf16 %v2848_v36  ;;  %v460_v56 = vpack.c.bf16 %v433_v47, %v432_v8 }
  0xa1   :  { %v2855_v49 = vunpack.i.h.bf16 %v2853_v43  ;;  %v2854_v50 = vunpack.i.l.bf16 %v2853_v43  ;;  %v467_v43 = vpack.c.bf16 %v3506_v52, %v3491_v48 }
  0xa2   :  { %697 = vmatmul.mubr.bf16.gmra.mrb[8].mxu0 %v458_v39  ;;  %v377_v51 = vsel %vm367_vm0, %v3394_v22, %v2850_v44  ;;  %v376_v53 = vsel %vm367_vm0, %v3378_v18, %v2849_v46 }
  0xa3   :  { %2455 = vmatprep.mubr.msk.bf16.mxu0 %vm367_vm0, %v461_v37  ;;  %v2858_v10 = vpop.permute.xlu0 %2857  ;;  %v405_v5 = vsel %vm396_vm1, %v376_v53, %v2854_v50  ;;  %v406_v9 = vsel %vm396_vm1, %v377_v51, %v2855_v49 }
  0xa4   :  { %v2863_v57 = vpop.permute.xlu1 %2862  ;;  %v2860_v59 = vunpack.i.h.bf16 %v2858_v10  ;;  %v2859_v61 = vunpack.i.l.bf16 %v2858_v10 }
  0xa5   :  { %v2865_v12 = vunpack.i.h.bf16 %v2863_v57  ;;  %v2864_v14 = vunpack.i.l.bf16 %v2863_v57 }
  0xa6   :  { %v434_v22 = vsel %vm425_vm2, %v405_v5, %v2859_v61  ;;  %v435_v18 = vsel %vm425_vm2, %v406_v9, %v2860_v59  ;;  %v469_v5 = vpack.c.bf16 %v3529_v58, %v3517_v55 }
  0xa7   :  { %v2868_v63 = vpop.permute.xlu0 %2867  ;;  %v379_v0 = vsel %vm367_vm0, %v3419_v29, %v2865_v12  ;;  %v378_v7 = vsel %vm367_vm0, %v3402_v24, %v2864_v14  ;;  %v462_v25 = vpack.c.bf16 %v435_v18, %v434_v22 }
  0xa8   :  { %v2870_v16 = vunpack.i.h.bf16 %v2868_v63  ;;  %v2869_v19 = vunpack.i.l.bf16 %v2868_v63  ;;  %v2873_v20 = vpop.permute.xlu1 %2872 }
  0xa9   :  { %v2875_v26 = vunpack.i.h.bf16 %v2873_v20  ;;  %v2874_v27 = vunpack.i.l.bf16 %v2873_v20 }
  0xaa   :  { %707 = vmatmul.mubr.bf16.gmra.mrb[12].mxu0 %v460_v56  ;;  %v408_v28 = vsel %vm396_vm1, %v379_v0, %v2870_v16  ;;  %v407_v34 = vsel %vm396_vm1, %v378_v7, %v2869_v19 }
  0xab   :  { %2456 = vmatprep.mubr.msk.bf16.mxu0 %vm367_vm0, %v463_v54  ;;  %v2878_v21 = vpop.permute.xlu0 %2877  ;;  %v436_v24 = vsel %vm425_vm2, %v407_v34, %v2874_v27  ;;  %v437_v39 = vsel %vm425_vm2, %v408_v28, %v2875_v26  ;;  %v471_v26 = vpack.c.bf16 %v3546_v62, %v3537_v60 }
  0xac   :  { %v2883_v35 = vpop.permute.xlu1 %2882  ;;  %v2880_v36 = vunpack.i.h.bf16 %v2878_v21  ;;  %v2879_v37 = vunpack.i.l.bf16 %v2878_v21  ;;  %v464_v44 = vpack.c.bf16 %v437_v39, %v436_v24 }
  0xad   :  { %v2885_v40 = vunpack.i.h.bf16 %v2883_v35  ;;  %v2884_v42 = vunpack.i.l.bf16 %v2883_v35 }
  0xae   :  { %v381_v2 = vsel %vm367_vm0, %v3454_v38, %v2880_v36  ;;  %v380_v1 = vsel %vm367_vm0, %v3434_v32, %v2879_v37 }
  0xaf   :  { %v2888_v29 = vpop.permute.xlu0 %2887  ;;  %v409_v49 = vsel %vm396_vm1, %v380_v1, %v2884_v42  ;;  %v410_v50 = vsel %vm396_vm1, %v381_v2, %v2885_v40 }
  0xb0   :  { %v2893_v46 = vpop.permute.xlu1 %2892  ;;  %v2890_v10 = vunpack.i.h.bf16 %v2888_v29  ;;  %v2889_v8 = vunpack.i.l.bf16 %v2888_v29 }
  0xb1   :  { %v2895_v51 = vunpack.i.h.bf16 %v2893_v46  ;;  %v2894_v53 = vunpack.i.l.bf16 %v2893_v46  ;;  %v473_v46 = vpack.c.bf16 %v3563_v6, %v3554_v3 }
  0xb2   :  { %717 = vmatmul.mubr.bf16.gmra.mrb[16].mxu0 %v462_v25  ;;  %v438_v38 = vsel %vm425_vm2, %v409_v49, %v2889_v8  ;;  %v439_v32 = vsel %vm425_vm2, %v410_v50, %v2890_v10 }
  0xb3   :  { %2457 = vmatprep.mubr.msk.bf16.mxu0 %vm367_vm0, %v465_v4  ;;  %v2898_v47 = vpop.permute.xlu0 %2897  ;;  %v383_v59 = vsel %vm367_vm0, %v3480_v45, %v2895_v51  ;;  %v382_v61 = vsel %vm367_vm0, %v3465_v41, %v2894_v53  ;;  %v466_v9 = vpack.c.bf16 %v439_v32, %v438_v38 }
  0xb4   :  { %v2900_v54 = vunpack.i.h.bf16 %v2898_v47  ;;  %v2899_v56 = vunpack.i.l.bf16 %v2898_v47  ;;  %v2903_v57 = vpop.permute.xlu1 %2902 }
  0xb5   :  { %v2905_v12 = vunpack.i.h.bf16 %v2903_v57  ;;  %v2904_v14 = vunpack.i.l.bf16 %v2903_v57 }
  0xb6   :  { %v412_v22 = vsel %vm396_vm1, %v383_v59, %v2900_v54  ;;  %v411_v18 = vsel %vm396_vm1, %v382_v61, %v2899_v56 }
  0xb7   :  { %v2908_v63 = vpop.permute.xlu0 %2907  ;;  %v440_v41 = vsel %vm425_vm2, %v411_v18, %v2904_v14  ;;  %v441_v0 = vsel %vm425_vm2, %v412_v22, %v2905_v12 }
  0xb8   :  { %v2913_v16 = vpop.permute.xlu1 %2912  ;;  %v2910_v19 = vunpack.i.h.bf16 %v2908_v63  ;;  %v2909_v20 = vunpack.i.l.bf16 %v2908_v63  ;;  %v468_v27 = vpack.c.bf16 %v441_v0, %v440_v41  ;;  %v475_v63 = vpack.c.bf16 %v3580_v13, %v3571_v11 }
  0xb9   :  { %v2915_v7 = vunpack.i.h.bf16 %v2913_v16  ;;  %v2914_v21 = vunpack.i.l.bf16 %v2913_v16 }
  0xba   :  { %727 = vmatmul.mubr.bf16.gmra.mrb[20].mxu0 %v464_v44  ;;  %v385_v4 = vsel %vm367_vm0, %v3506_v52, %v2910_v19  ;;  %v384_v25 = vsel %vm367_vm0, %v3491_v48, %v2909_v20 }
  0xbb   :  { %2458 = vmatprep.mubr.msk.bf16.mxu0 %vm367_vm0, %v467_v43  ;;  %v2918_v45 = vpop.permute.xlu0 %2917  ;;  %v413_v37 = vsel %vm396_vm1, %v384_v25, %v2914_v21  ;;  %v414_v29 = vsel %vm396_vm1, %v385_v4, %v2915_v7 }
  0xbc   :  { %v2923_v28 = vpop.permute.xlu1 %2922  ;;  %v2920_v34 = vunpack.i.h.bf16 %v2918_v45  ;;  %v2919_v35 = vunpack.i.l.bf16 %v2918_v45 }
  0xbd   :  { %v2925_v24 = vunpack.i.h.bf16 %v2923_v28  ;;  %v2924_v39 = vunpack.i.l.bf16 %v2923_v28 }
  0xbe   :  { %v442_v52 = vsel %vm425_vm2, %v413_v37, %v2919_v35  ;;  %v443_v48 = vsel %vm425_vm2, %v414_v29, %v2920_v34  ;;  %v3052_v29 = vld [vmem:[%s4195_s3 + $0x80] ss:$8 sps:$4 sm:$0xff]  }
  0xbf   :  { %v2928_v36 = vpop.permute.xlu0 %2927  ;;  %v387_v1 = vsel %vm367_vm0, %v3529_v58, %v2925_v24  ;;  %v386_v43 = vsel %vm367_vm0, %v3517_v55, %v2924_v39  ;;  %v470_v10 = vpack.c.bf16 %v443_v48, %v442_v52  ;;  %1473 = vmatpush1.bf16.msra.mxu1 %v3052_v29 }
  0xc0   :  { %v2930_v40 = vunpack.i.h.bf16 %v2928_v36  ;;  %v2929_v42 = vunpack.i.l.bf16 %v2928_v36  ;;  %v2933_v2 = vpop.permute.xlu1 %2932 }
  0xc1   :  { %v2935_v8 = vunpack.i.h.bf16 %v2933_v2  ;;  %v2934_v47 = vunpack.i.l.bf16 %v2933_v2 }
  0xc2   :  { %737 = vmatmul.mubr.bf16.gmra.mrb[24].mxu0 %v466_v9  ;;  %v416_v49 = vsel %vm396_vm1, %v387_v1, %v2930_v40  ;;  %v415_v50 = vsel %vm396_vm1, %v386_v43, %v2929_v42  ;;  %v3053_v1 = vld [vmem:[%s4195_s3 + $0x94] ss:$8 sps:$4 sm:$0xff]  }
  0xc3   :  { %2459 = vmatprep.mubr.msk.bf16.mxu0 %vm367_vm0, %v469_v5  ;;  %v2938_v44 = vpop.permute.xlu0 %2937  ;;  %v444_v55 = vsel %vm425_vm2, %v415_v50, %v2934_v47  ;;  %v445_v32 = vsel %vm425_vm2, %v416_v49, %v2935_v8  ;;  %1474 = vmatprep.subr.bf16.mxu1 %v3053_v1  ;;  %v3056_v49 = vld [vmem:[%s4195_s3 + $0xa4] ss:$8 sps:$4 sm:$0xff]  }
  0xc4   :  { %v2943_v51 = vpop.permute.xlu1 %2942  ;;  %v2940_v53 = vunpack.i.h.bf16 %v2938_v44  ;;  %v2939_v38 = vunpack.i.l.bf16 %v2938_v44  ;;  %v472_v5 = vpack.c.bf16 %v445_v32, %v444_v55 }
  0xc5   :  { %v2945_v54 = vunpack.i.h.bf16 %v2943_v51  ;;  %v2944_v56 = vunpack.i.l.bf16 %v2943_v51 }
  0xc6   :  { %v389_v59 = vsel %vm367_vm0, %v3546_v62, %v2940_v53  ;;  %v388_v61 = vsel %vm367_vm0, %v3537_v60, %v2939_v38  ;;  %v3058_v53 = vld [vmem:[%s4195_s3 + $0xa0] ss:$8 sps:$4 sm:$0xff]   ;;  %v84_v38 = vld [vmem:[%s4192_s0 + $0xf8] sm:$0xff] }
  0xc7   :  { %v2948_v58 = vpop.permute.xlu0 %2947  ;;  %v417_v16 = vsel %vm396_vm1, %v388_v61, %v2944_v56  ;;  %v418_v19 = vsel %vm396_vm1, %v389_v59, %v2945_v54  ;;  %v3059_v54 = vld [vmem:[%s4195_s3 + $0xb4] ss:$8 sps:$4 sm:$0xff]   ;;  %v481_v56 = vpack.c.bf16 %v84_v38, %v3612_v23  ;;  %v3061_v61 = vld [vmem:[%s4195_s3 + $0xb0] ss:$8 sps:$4 sm:$0xff]  }
  0xc8   :  { %v2953_v57 = vpop.permute.xlu1 %2952  ;;  %v2950_v9 = vunpack.i.h.bf16 %v2948_v58  ;;  %v2949_v12 = vunpack.i.l.bf16 %v2948_v58 }
  0xc9   :  { %v2955_v14 = vunpack.i.h.bf16 %v2953_v57  ;;  %v2954_v22 = vunpack.i.l.bf16 %v2953_v57 }
  0xca   :  { %747 = vmatmul.mubr.bf16.gmra.mrb[28].mxu0 %v468_v27  ;;  %v446_v0 = vsel %vm425_vm2, %v417_v16, %v2949_v12  ;;  %v447_v7 = vsel %vm425_vm2, %v418_v19, %v2950_v9  ;;  %v3064_v9 = vld [vmem:[%s4195_s3 + $0xc0] ss:$8 sps:$4 sm:$0xff]   ;;  %v3071_v19 = vld [vmem:[%s4195_s3 + $0xf4] ss:$8 sps:$4 sm:$0xff]  }
  0xcb   :  { %2460 = vmatprep.mubr.msk.bf16.mxu0 %vm367_vm0, %v471_v26  ;;  %v2958_v18 = vpop.permute.xlu0 %2957  ;;  %v391_v60 = vsel %vm367_vm0, %v3563_v6, %v2955_v14  ;;  %v390_v41 = vsel %vm367_vm0, %v3554_v3, %v2954_v22  ;;  %v477_v26 = vpack.c.bf16 %v3597_v17, %v3588_v15  ;;  %v474_v27 = vpack.c.bf16 %v447_v7, %v446_v0  ;;  %v3065_v14 = vld [vmem:[%s4195_s3 + $0xd4] ss:$8 sps:$4 sm:$0xff]   ;;  %v3067_v22 = vld [vmem:[%s4195_s3 + $0xd0] ss:$8 sps:$4 sm:$0xff]   ;;  %v3070_v16 = vld [vmem:[%s4195_s3 + $0xe0] ss:$8 sps:$4 sm:$0xff]  }
  0xcc   :  { %v2960_v62 = vunpack.i.h.bf16 %v2958_v18  ;;  %v2959_v20 = vunpack.i.l.bf16 %v2958_v18  ;;  %v2963_v45 = vpop.permute.xlu1 %2962  ;;  %v3068_v18 = vld [vmem:[%s4195_s3 + $0xe4] ss:$8 sps:$4 sm:$0xff]  }
  0xcd   :  { %v2965_v4 = vunpack.i.h.bf16 %v2963_v45  ;;  %v2964_v25 = vunpack.i.l.bf16 %v2963_v45 }
  0xce   :  { %v420_v28 = vsel %vm396_vm1, %v391_v60, %v2960_v62  ;;  %v419_v34 = vsel %vm396_vm1, %v390_v41, %v2959_v20  ;;  %v3073_v62 = vld [vmem:[%s4195_s3 + $0xf0] ss:$8 sps:$4 sm:$0xff]   ;;  %v3076_v20 = vld [vmem:[%s4195_s3 + $0x104] ss:$8 sps:$4 sm:$0xff]   ;;  %v3881_v41 = vld [vmem:[%s4194_s2] ss:$0 sm:$0xff] }
  0xcf   :  { %v2968_v21 = vpop.permute.xlu0 %2967  ;;  %v448_v3 = vsel %vm425_vm2, %v419_v34, %v2964_v25  ;;  %v449_v37 = vsel %vm425_vm2, %v420_v28, %v2965_v4 }
  0xd0   :  { %v2973_v35 = vpop.permute.xlu1 %2972  ;;  %v2970_v6 = vunpack.i.h.bf16 %v2968_v21  ;;  %v2969_v36 = vunpack.i.l.bf16 %v2968_v21  ;;  %v476_v42 = vpack.c.bf16 %v449_v37, %v448_v3 }
  0xd1   :  { %v2975_v24 = vunpack.i.h.bf16 %v2973_v35  ;;  %v2974_v39 = vunpack.i.l.bf16 %v2973_v35 }
  0xd2   :  { %757 = vmatmul.mubr.bf16.gmra.mrb[32].mxu0 %v470_v10  ;;  %v393_v48 = vsel %vm367_vm0, %v3580_v13, %v2970_v6  ;;  %v392_v40 = vsel %vm367_vm0, %v3571_v11, %v2969_v36 }
  0xd3   :  { %2461 = vmatprep.mubr.msk.bf16.mxu0 %vm367_vm0, %v473_v46  ;;  %v2978_v52 = vpop.permute.xlu0 %2977  ;;  %v3055_v46 = vld [vmem:[%s4195_s3 + $0x90] ss:$8 sps:$4 sm:$0xff]   ;;  %v421_v10 = vsel %vm396_vm1, %v392_v40, %v2974_v39  ;;  %v422_v13 = vsel %vm396_vm1, %v393_v48, %v2975_v24 }
  0xd4   :  { %v2983_v2 = vpop.permute.xlu1 %2982  ;;  %v2980_v43 = vunpack.i.h.bf16 %v2978_v52  ;;  %v2979_v44 = vunpack.i.l.bf16 %v2978_v52  ;;  %1475 = vmatpush1.bf16.msra.mxu1 %v3055_v46 }
  0xd5   :  { %v2985_v8 = vunpack.i.h.bf16 %v2983_v2  ;;  %v2984_v11 = vunpack.i.l.bf16 %v2983_v2  ;;  %1476 = vmatprep.subr.bf16.mxu1 %v3056_v49 }
  0xd6   :  { %v450_v50 = vsel %vm425_vm2, %v421_v10, %v2979_v44  ;;  %v451_v51 = vsel %vm425_vm2, %v422_v13, %v2980_v43 }
  0xd7   :  { %v2988_v47 = vpop.permute.xlu0 %2987  ;;  %v395_v30 = vsel %vm367_vm0, %v3597_v17, %v2985_v8  ;;  %v394_v31 = vsel %vm367_vm0, %v3588_v15, %v2984_v11  ;;  %v3062_v15 = vld [vmem:[%s4195_s3 + $0xc4] ss:$8 sps:$4 sm:$0xff]  }
  0xd8   :  { %v2990_v58 = vunpack.i.h.bf16 %v2988_v47  ;;  %v2989_v55 = vunpack.i.l.bf16 %v2988_v47  ;;  %v2993_v32 = vpop.permute.xlu1 %2992  ;;  %1477 = vmatpush1.bf16.msra.mxu1 %v3058_v53 }
  0xd9   :  { %v2995_v57 = vunpack.i.h.bf16 %v2993_v32  ;;  %v2994_v59 = vunpack.i.l.bf16 %v2993_v32  ;;  %1478 = vmatprep.subr.bf16.mxu1 %v3059_v54 }
  0xda   :  { %767 = vmatmul.mubr.bf16.gmra.mrb[36].mxu0 %v472_v5  ;;  %v423_v17 = vsel %vm396_vm1, %v394_v31, %v2989_v55  ;;  %v3074_v31 = vld [vmem:[%s4195_s3 + $0x100] ss:$8 sps:$4 sm:$0xff]  }
  0xdb   :  { %2462 = vmatprep.mubr.msk.bf16.mxu0 %vm367_vm0, %v475_v63  ;;  %v424_v63 = vsel %vm396_vm1, %v395_v30, %v2990_v58  ;;  %v452_v23 = vsel %vm425_vm2, %v423_v17, %v2994_v59  ;;  %v3082_v17 = vld [vmem:[%s4195_s3 + $0x124] ss:$8 sps:$4 sm:$0xff]  }
  0xdc   :  { %1479 = vmatpush1.bf16.msra.mxu1 %v3061_v61  ;;  %v453_v5 = vsel %vm425_vm2, %v424_v63, %v2995_v57  ;;  %v3077_v61 = vld [vmem:[%s4195_s3 + $0x110] ss:$8 sps:$4 sm:$0xff]  }
  0xdd   :  { %1480 = vmatprep.subr.bf16.mxu1 %v3062_v15  ;;  %v480_v12 = vpack.c.bf16 %v453_v5, %v452_v23 }
  0xe0   :  { %1481 = vmatpush1.bf16.msra.mxu1 %v3064_v9 }
  0xe1   :  { %1482 = vmatprep.subr.bf16.mxu1 %v3065_v14 }
  0xe2   :  { %777 = vmatmul.mubr.bf16.gmra.mrb[40].mxu0 %v474_v27 }
  0xe3   :  { %2463 = vmatprep.mubr.msk.bf16.mxu0 %vm367_vm0, %v477_v26 }
  0xe4   :  { %1483 = vmatpush1.bf16.msra.mxu1 %v3067_v22  ;;  %v3080_v22 = vld [vmem:[%s4195_s3 + $0x120] ss:$8 sps:$4 sm:$0xff]  }
  0xe5   :  { %1484 = vmatprep.subr.bf16.mxu1 %v3068_v18 }
  0xe8   :  { %1485 = vmatpush1.bf16.msra.mxu1 %v3070_v16  ;;  %v3085_v16 = vld [vmem:[%s4195_s3 + $0x134] ss:$8 sps:$4 sm:$0xff]  }
  0xe9   :  { %1486 = vmatprep.subr.bf16.mxu1 %v3071_v19 }
  0xea   :  { %787 = vmatmul.mubr.bf16.gmra.mrb[44].mxu0 %v476_v42 }
  0xeb   :  { %2464 = vmatprep.mubr.msk.bf16.mxu0 %vm367_vm0, %v479_v33  ;;  %v478_v33 = vpack.c.bf16 %v451_v51, %v450_v50 }
  0xec   :  { %1487 = vmatpush1.bf16.msra.mxu1 %v3073_v62 }
  0xed   :  { %1539 = vmatprep.subr.bf16.mxu1 %v3076_v20 }
  0xf2   :  { %797 = vmatmul.mubr.bf16.gmra.mrb[48].mxu0 %v478_v33  ;;  %v3079_v33 = vld [vmem:[%s4195_s3 + $0x114] ss:$8 sps:$4 sm:$0xff]  }
  0xf3   :  { %2465 = vmatprep.mubr.msk.bf16.mxu0 %vm367_vm0, %v481_v56 }
  0xfa   :  { %807 = vmatmul.mubr.bf16.gmra.mrb[52].mxu0 %v480_v12 }
 0x165   :  { %v678_v45 = vpop.f32.mrb[0].mxu0 }
 0x166   :  { %v680_v60 = vpop.f32.mrb[1].mxu0 }
 0x167   :  { %v817_v0 = vmax.f32 %v678_v45, %v680_v60  ;;  %v682_v7 = vpop.f32.mrb[2].mxu0  ;;  %v3083_v60 = vld [vmem:[%s4195_s3 + $0x130] ss:$8 sps:$4 sm:$0xff]  }
 0x168   :  { %v684_v21 = vpop.f32.mrb[3].mxu0 }
 0x169   :  { %v852_v4 = vadd.f32 %v3881_v41, %v817_v0  ;;  %v818_v25 = vmax.f32 %v682_v7, %v684_v21  ;;  %v3088_v7 = vld [vmem:[%s4195_s3 + $0x144] ss:$8 sps:$4 sm:$0xff]  }
 0x16b   :  { %v853_v26 = vadd.f32 %v3881_v41, %v818_v25  ;;  %v880_v27 = vmax.f32 %v852_v4, 0.0 }
 0x16d   :  { %v881_v28 = vmax.f32 %v853_v26, 0.0  ;;  %v688_v34 = vpop.f32.mrb[4].mxu0 }
 0x16e   :  { %v690_v35 = vpop.f32.mrb[5].mxu0 }
 0x16f   :  { %v908_v6 = vmax.f32 %v880_v27, %v881_v28  ;;  %v819_v36 = vmax.f32 %v688_v34, %v690_v35  ;;  %v692_v3 = vpop.f32.mrb[6].mxu0  ;;  %v3086_v35 = vld [vmem:[%s4195_s3 + $0x140] ss:$8 sps:$4 sm:$0xff]  }
 0x170   :  { %v694_v37 = vpop.f32.mrb[7].mxu0 }
 0x171   :  { %v854_v29 = vadd.f32 %v3881_v41, %v819_v36  ;;  %v820_v24 = vmax.f32 %v692_v3, %v694_v37  ;;  %v3146_v3 = vld [vmem:[#allocation3 + $0x40] sm:$0xff]  }
 0x172   :  { %v3147_v37 = vld [vmem:[#allocation3] sm:$0xff]   ;;  %2607 = vmatprep.subr.bf16.mxu0 %v3146_v3  ;;  %v3159_v3 = vld [vmem:[#allocation3 + $0x30] sm:$0xff]  }
 0x173   :  { %v855_v39 = vadd.f32 %v3881_v41, %v820_v24  ;;  %v882_v52 = vmax.f32 %v854_v29, 0.0  ;;  %v3148_v29 = vld [vmem:[#allocation3 + $0x48] sm:$0xff]   ;;  %2608 = vmatpush3.bf16.msra.mxu0 %v3147_v37 }
 0x174   :  { %2609 = vmatprep.subr.bf16.mxu0 %v3148_v29 }
 0x175   :  { %v883_v48 = vmax.f32 %v855_v39, 0.0  ;;  %v698_v40 = vpop.f32.mrb[8].mxu0 }
 0x176   :  { %v700_v42 = vpop.f32.mrb[9].mxu0 }
 0x177   :  { %v821_v2 = vmax.f32 %v698_v40, %v700_v42  ;;  %v702_v1 = vpop.f32.mrb[10].mxu0  ;;  %v910_v43 = vmax.f32 %v882_v52, %v883_v48  ;;  %v3089_v48 = vld [vmem:[%s4195_s3 + $0x150] ss:$8 sps:$4 sm:$0xff]   ;;  %v3094_v42 = vld [vmem:[%s4195_s3 + $0x164] ss:$8 sps:$4 sm:$0xff]  }
 0x178   :  { %v704_v44 = vpop.f32.mrb[11].mxu0 }
 0x179   :  { %v856_v46 = vadd.f32 %v3881_v41, %v821_v2  ;;  %v822_v10 = vmax.f32 %v702_v1, %v704_v44  ;;  %v959_v13 = vpack.c.bf16 %v910_v43, %v908_v6  ;;  %v3091_v6 = vld [vmem:[%s4195_s3 + $0x154] ss:$8 sps:$4 sm:$0xff]   ;;  %v3149_v44 = vld [vmem:[#allocation3 + $0x8] sm:$0xff]  }
 0x17a   :  { %2610 = vmatpush3.bf16.msra.mxu0 %v3149_v44 }
 0x17b   :  { %v857_v8 = vadd.f32 %v3881_v41, %v822_v10  ;;  %v884_v11 = vmax.f32 %v856_v46, 0.0  ;;  %v3150_v10 = vld [vmem:[#allocation3 + $0x50] sm:$0xff]  }
 0x17c   :  { %2611 = vmatprep.subr.bf16.mxu0 %v3150_v10  ;;  %v3110_v10 = vld [vmem:[%s4195_s3 + $0x1c0] ss:$8 sps:$4 sm:$0xff]  }
 0x17d   :  { %v885_v47 = vmax.f32 %v857_v8, 0.0  ;;  %v708_v49 = vpop.f32.mrb[12].mxu0 }
 0x17e   :  { %v710_v50 = vpop.f32.mrb[13].mxu0 }
 0x17f   :  { %v823_v51 = vmax.f32 %v708_v49, %v710_v50  ;;  %v712_v53 = vpop.f32.mrb[14].mxu0  ;;  %v912_v38 = vmax.f32 %v884_v11, %v885_v47  ;;  %v3092_v11 = vld [vmem:[%s4195_s3 + $0x160] ss:$8 sps:$4 sm:$0xff]   ;;  %v3097_v49 = vld [vmem:[%s4195_s3 + $0x174] ss:$8 sps:$4 sm:$0xff]  }
 0x180   :  { %v714_v58 = vpop.f32.mrb[15].mxu0 }
 0x181   :  { %v858_v55 = vadd.f32 %v3881_v41, %v823_v51  ;;  %v824_v32 = vmax.f32 %v712_v53, %v714_v58  ;;  %v960_v30 = vpack.c.bf16 %v912_v38, %v910_v43  ;;  %v3151_v51 = vld [vmem:[#allocation3 + $0x10] sm:$0xff]   ;;  %v3152_v53 = vld [vmem:[#allocation3 + $0x58] sm:$0xff]  }
 0x182   :  { %2612 = vmatpush3.bf16.msra.mxu0 %v3151_v51  ;;  %v3113_v51 = vld [vmem:[%s4195_s3 + $0x1d0] ss:$8 sps:$4 sm:$0xff]  }
 0x183   :  { %v859_v54 = vadd.f32 %v3881_v41, %v824_v32  ;;  %1488 = vmatprep.mubr.bf16.mxu1 %v960_v30  ;;  %v886_v56 = vmax.f32 %v858_v55, 0.0  ;;  %v3095_v32 = vld [vmem:[%s4195_s3 + $0x170] ss:$8 sps:$4 sm:$0xff]   ;;  %2613 = vmatprep.subr.bf16.mxu0 %v3152_v53 }
 0x184   :  { %1489 = vmatmul.mubr.bf16.vlgmr.msra.gmra.mrb[0].mxu1 %v959_v13 }
 0x185   :  { %v887_v57 = vmax.f32 %v859_v54, 0.0  ;;  %v718_v59 = vpop.f32.mrb[16].mxu0  ;;  %1540 = vmatpush1.bf16.msra.mxu1 %v3074_v31  ;;  %v3100_v31 = vld [vmem:[%s4195_s3 + $0x184] ss:$8 sps:$4 sm:$0xff]  }
 0x186   :  { %v720_v63 = vpop.f32.mrb[17].mxu0  ;;  %1541 = vmatprep.subr.bf16.mxu1 %v3079_v33 }
 0x187   :  { %v914_v15 = vmax.f32 %v886_v56, %v887_v57  ;;  %v825_v23 = vmax.f32 %v718_v59, %v720_v63  ;;  %v722_v5 = vpop.f32.mrb[18].mxu0  ;;  %v3153_v57 = vld [vmem:[#allocation3 + $0x18] sm:$0xff]  }
 0x188   :  { %v724_v9 = vpop.f32.mrb[19].mxu0  ;;  %2614 = vmatpush3.bf16.msra.mxu0 %v3153_v57  ;;  %v3121_v57 = vld [vmem:[%s4195_s3 + $0x1f4] ss:$8 sps:$4 sm:$0xff]  }
 0x189   :  { %v860_v12 = vadd.f32 %v3881_v41, %v825_v23  ;;  %v826_v14 = vmax.f32 %v722_v5, %v724_v9  ;;  %1542 = vmatpush1.bf16.msra.mxu1 %v3077_v61  ;;  %v3907_v18 = vpack.c.bf16 %v914_v15, %v912_v38  ;;  %v3154_v61 = vld [vmem:[#allocation3 + $0x60] sm:$0xff]   ;;  %v3103_v5 = vld [vmem:[%s4195_s3 + $0x194] ss:$8 sps:$4 sm:$0xff]  }
 0x18a   :  { %1543 = vmatprep.subr.bf16.mxu1 %v3082_v17  ;;  %v3098_v23 = vld [vmem:[%s4195_s3 + $0x180] ss:$8 sps:$4 sm:$0xff]   ;;  %2615 = vmatprep.subr.bf16.mxu0 %v3154_v61 }
 0x18b   :  { %v861_v19 = vadd.f32 %v3881_v41, %v826_v14  ;;  %v888_v62 = vmax.f32 %v860_v12, 0.0  ;;  %v3155_v12 = vld [vmem:[#allocation3 + $0x20] sm:$0xff]   ;;  %v3156_v14 = vld [vmem:[#allocation3 + $0x68] sm:$0xff]  }
 0x18c   :  { %2616 = vmatpush3.bf16.msra.mxu0 %v3155_v12 }
 0x18d   :  { %v889_v20 = vmax.f32 %v861_v19, 0.0  ;;  %v728_v45 = vpop.f32.mrb[20].mxu0  ;;  %1544 = vmatpush1.bf16.msra.mxu1 %v3080_v22  ;;  %2617 = vmatprep.subr.bf16.mxu0 %v3156_v14 }
 0x18e   :  { %v730_v0 = vpop.f32.mrb[21].mxu0  ;;  %1545 = vmatprep.subr.bf16.mxu1 %v3085_v16 }
 0x18f   :  { %v916_v21 = vmax.f32 %v888_v62, %v889_v20  ;;  %v827_v4 = vmax.f32 %v728_v45, %v730_v0  ;;  %v732_v25 = vpop.f32.mrb[22].mxu0  ;;  %v3101_v62 = vld [vmem:[%s4195_s3 + $0x190] ss:$8 sps:$4 sm:$0xff]   ;;  %v3106_v45 = vld [vmem:[%s4195_s3 + $0x1a4] ss:$8 sps:$4 sm:$0xff]  }
 0x190   :  { %v734_v26 = vpop.f32.mrb[23].mxu0 }
 0x191   :  { %v862_v27 = vadd.f32 %v3881_v41, %v827_v4  ;;  %v828_v28 = vmax.f32 %v732_v25, %v734_v26  ;;  %v3920_v34 = vpack.c.bf16 %v916_v21, %v914_v15  ;;  %1546 = vmatpush1.bf16.msra.mxu1 %v3083_v60  ;;  %v3158_v25 = vld [vmem:[#allocation3 + $0x70] sm:$0xff]  }
 0x192   :  { %1547 = vmatprep.subr.bf16.mxu1 %v3088_v7 }
 0x193   :  { %v863_v36 = vadd.f32 %v3881_v41, %v828_v28  ;;  %1498 = vmatprep.mubr.bf16.mxu1 %v3920_v34  ;;  %v890_v24 = vmax.f32 %v862_v27, 0.0  ;;  %v3104_v28 = vld [vmem:[%s4195_s3 + $0x1a0] ss:$8 sps:$4 sm:$0xff]  }
 0x194   :  { %1499 = vmatmul.mubr.bf16.gmra.mrb[4].mxu1 %v3907_v18 }
 0x195   :  { %v891_v39 = vmax.f32 %v863_v36, 0.0  ;;  %v738_v52 = vpop.f32.mrb[24].mxu0  ;;  %1548 = vmatpush1.bf16.msra.mxu1 %v3086_v35 }
 0x196   :  { %v740_v40 = vpop.f32.mrb[25].mxu0  ;;  %1549 = vmatprep.subr.bf16.mxu1 %v3091_v6  ;;  %v3109_v6 = vld [vmem:[%s4195_s3 + $0x1b4] ss:$8 sps:$4 sm:$0xff]  }
 0x197   :  { %v918_v2 = vmax.f32 %v890_v24, %v891_v39  ;;  %v829_v1 = vmax.f32 %v738_v52, %v740_v40  ;;  %v742_v43 = vpop.f32.mrb[26].mxu0  ;;  %v3107_v39 = vld [vmem:[%s4195_s3 + $0x1b0] ss:$8 sps:$4 sm:$0xff]  }
 0x198   :  { %v744_v46 = vpop.f32.mrb[27].mxu0 }
 0x199   :  { %v864_v13 = vadd.f32 %v3881_v41, %v829_v1  ;;  %v830_v8 = vmax.f32 %v742_v43, %v744_v46  ;;  %1550 = vmatpush1.bf16.msra.mxu1 %v3089_v48  ;;  %v3941_v47 = vpack.c.bf16 %v918_v2, %v916_v21  ;;  %v3157_v21 = vld [vmem:[#allocation3 + $0x28] sm:$0xff]  }
 0x19a   :  { %1551 = vmatprep.subr.bf16.mxu1 %v3094_v42  ;;  %2618 = vmatpush3.bf16.msra.mxu0 %v3157_v21  ;;  %v3112_v48 = vld [vmem:[%s4195_s3 + $0x1c4] ss:$8 sps:$4 sm:$0xff]  }
 0x19b   :  { %v865_v50 = vadd.f32 %v3881_v41, %v830_v8  ;;  %v892_v38 = vmax.f32 %v864_v13, 0.0  ;;  %2619 = vmatprep.subr.bf16.mxu0 %v3158_v25  ;;  %v3115_v13 = vld [vmem:[%s4195_s3 + $0x1d4] ss:$8 sps:$4 sm:$0xff]  }
 0x19d   :  { %v893_v58 = vmax.f32 %v865_v50, 0.0  ;;  %v748_v55 = vpop.f32.mrb[28].mxu0  ;;  %1552 = vmatpush1.bf16.msra.mxu1 %v3092_v11 }
 0x19e   :  { %v750_v30 = vpop.f32.mrb[29].mxu0  ;;  %1553 = vmatprep.subr.bf16.mxu1 %v3097_v49  ;;  %2620 = vmatpush3.bf16.msra.mxu0 %v3159_v3 }
 0x19f   :  { %v920_v33 = vmax.f32 %v892_v38, %v893_v58  ;;  %v831_v54 = vmax.f32 %v748_v55, %v750_v30  ;;  %v752_v56 = vpop.f32.mrb[30].mxu0  ;;  %v3118_v38 = vld [vmem:[%s4195_s3 + $0x1e4] ss:$8 sps:$4 sm:$0xff]  }
 0x1a0   :  { %v754_v59 = vpop.f32.mrb[31].mxu0 }
 0x1a1   :  { %v866_v63 = vadd.f32 %v3881_v41, %v831_v54  ;;  %v832_v17 = vmax.f32 %v752_v56, %v754_v59  ;;  %v3954_v15 = vpack.c.bf16 %v920_v33, %v918_v2  ;;  %1554 = vmatpush1.bf16.msra.mxu1 %v3095_v32  ;;  %v3116_v54 = vld [vmem:[%s4195_s3 + $0x1e0] ss:$8 sps:$4 sm:$0xff]  }
 0x1a2   :  { %1555 = vmatprep.subr.bf16.mxu1 %v3100_v31 }
 0x1a3   :  { %v867_v9 = vadd.f32 %v3881_v41, %v832_v17  ;;  %1508 = vmatprep.mubr.bf16.mxu1 %v3954_v15  ;;  %v894_v22 = vmax.f32 %v866_v63, 0.0 }
 0x1a4   :  { %1509 = vmatmul.mubr.bf16.gmra.mrb[8].mxu1 %v3941_v47 }
 0x1a5   :  { %v895_v16 = vmax.f32 %v867_v9, 0.0  ;;  %v758_v19 = vpop.f32.mrb[32].mxu0  ;;  %1556 = vmatpush1.bf16.msra.mxu1 %v3098_v23  ;;  %v3119_v23 = vld [vmem:[%s4195_s3 + $0x1f0] ss:$8 sps:$4 sm:$0xff]   ;;  %v3124_v9 = vld [vmem:[%s4195_s3 + $0x204] ss:$8 sps:$4 sm:$0xff]  }
 0x1a6   :  { %v760_v20 = vpop.f32.mrb[33].mxu0  ;;  %1557 = vmatprep.subr.bf16.mxu1 %v3103_v5 }
 0x1a7   :  { %v922_v60 = vmax.f32 %v894_v22, %v895_v16  ;;  %v833_v0 = vmax.f32 %v758_v19, %v760_v20  ;;  %v762_v7 = vpop.f32.mrb[34].mxu0 }
 0x1a8   :  { %v764_v4 = vpop.f32.mrb[35].mxu0 }
 0x1a9   :  { %v868_v26 = vadd.f32 %v3881_v41, %v833_v0  ;;  %v834_v27 = vmax.f32 %v762_v7, %v764_v4  ;;  %1558 = vmatpush1.bf16.msra.mxu1 %v3101_v62  ;;  %v3975_v35 = vpack.c.bf16 %v922_v60, %v920_v33 }
 0x1aa   :  { %1559 = vmatprep.subr.bf16.mxu1 %v3106_v45 }
 0x1ab   :  { %v869_v36 = vadd.f32 %v3881_v41, %v834_v27  ;;  %v896_v37 = vmax.f32 %v868_v26, 0.0 }
 0x1ad   :  { %v897_v29 = vmax.f32 %v869_v36, 0.0  ;;  %v768_v24 = vpop.f32.mrb[36].mxu0  ;;  %1560 = vmatpush1.bf16.msra.mxu1 %v3104_v28  ;;  %v3122_v28 = vld [vmem:[%s4195_s3 + $0x200] ss:$8 sps:$4 sm:$0xff]  }
 0x1ae   :  { %v770_v52 = vpop.f32.mrb[37].mxu0  ;;  %1561 = vmatprep.subr.bf16.mxu1 %v3109_v6 }
 0x1af   :  { %v924_v40 = vmax.f32 %v896_v37, %v897_v29  ;;  %v835_v42 = vmax.f32 %v768_v24, %v770_v52  ;;  %v772_v2 = vpop.f32.mrb[38].mxu0  ;;  %v3127_v37 = vld [vmem:[%s4195_s3 + $0x214] ss:$8 sps:$4 sm:$0xff]   ;;  %v3125_v24 = vld [vmem:[%s4195_s3 + $0x210] ss:$8 sps:$4 sm:$0xff]  }
 0x1b0   :  { %v774_v1 = vpop.f32.mrb[39].mxu0 }
 0x1b1   :  { %v870_v43 = vadd.f32 %v3881_v41, %v835_v42  ;;  %v836_v44 = vmax.f32 %v772_v2, %v774_v1  ;;  %v3988_v46 = vpack.c.bf16 %v924_v40, %v922_v60  ;;  %1562 = vmatpush1.bf16.msra.mxu1 %v3107_v39 }
 0x1b2   :  { %1563 = vmatprep.subr.bf16.mxu1 %v3112_v48  ;;  %v3130_v48 = vld [vmem:[%s4195_s3 + $0x224] ss:$8 sps:$4 sm:$0xff]  }
 0x1b3   :  { %v871_v8 = vadd.f32 %v3881_v41, %v836_v44  ;;  %1518 = vmatprep.mubr.bf16.mxu1 %v3988_v46  ;;  %v898_v11 = vmax.f32 %v870_v43, 0.0 }
 0x1b4   :  { %1519 = vmatmul.mubr.bf16.gmra.mrb[12].mxu1 %v3975_v35 }
 0x1b5   :  { %v899_v49 = vmax.f32 %v871_v8, 0.0  ;;  %v778_v50 = vpop.f32.mrb[40].mxu0  ;;  %1564 = vmatpush1.bf16.msra.mxu1 %v3110_v10 }
 0x1b6   :  { %v780_v53 = vpop.f32.mrb[41].mxu0  ;;  %1565 = vmatprep.subr.bf16.mxu1 %v3115_v13  ;;  %v3133_v13 = vld [vmem:[%s4195_s3 + $0x234] ss:$8 sps:$4 sm:$0xff]  }
 0x1b7   :  { %v926_v58 = vmax.f32 %v898_v11, %v899_v49  ;;  %v837_v55 = vmax.f32 %v778_v50, %v780_v53  ;;  %v782_v32 = vpop.f32.mrb[42].mxu0  ;;  %v3131_v49 = vld [vmem:[%s4195_s3 + $0x230] ss:$8 sps:$4 sm:$0xff]  }
 0x1b8   :  { %v784_v30 = vpop.f32.mrb[43].mxu0 }
 0x1b9   :  { %v872_v31 = vadd.f32 %v3881_v41, %v837_v55  ;;  %v838_v33 = vmax.f32 %v782_v32, %v784_v30  ;;  %1566 = vmatpush1.bf16.msra.mxu1 %v3113_v51  ;;  %v4009_v56 = vpack.c.bf16 %v926_v58, %v924_v40  ;;  %v3136_v51 = vld [vmem:[%s4195_s3 + $0x244] ss:$8 sps:$4 sm:$0xff]   ;;  %v3140_v32 = vld [vmem:[%s4195_s3 + $0x260] ss:$8 sps:$4 sm:$0xff]   ;;  %v3145_v30 = vld [vmem:[%s4195_s3 + $0x274] ss:$8 sps:$4 sm:$0xff]  }
 0x1ba   :  { %1567 = vmatprep.subr.bf16.mxu1 %v3118_v38  ;;  %v3142_v55 = vld [vmem:[%s4195_s3 + $0x264] ss:$8 sps:$4 sm:$0xff]  }
 0x1bb   :  { %v873_v59 = vadd.f32 %v3881_v41, %v838_v33  ;;  %v900_v61 = vmax.f32 %v872_v31, 0.0  ;;  %v3143_v31 = vld [vmem:[%s4195_s3 + $0x270] ss:$8 sps:$4 sm:$0xff]   ;;  %v3231_v33 = vmov 0  }
 0x1bd   :  { %v901_v63 = vmax.f32 %v873_v59, 0.0  ;;  %v788_v17 = vpop.f32.mrb[44].mxu0  ;;  %1568 = vmatpush1.bf16.msra.mxu1 %v3116_v54  ;;  %v3160_v54 = vld [vmem:[#allocation3 + $0x78] sm:$0xff]  }
 0x1be   :  { %v790_v5 = vpop.f32.mrb[45].mxu0  ;;  %1569 = vmatprep.subr.bf16.mxu1 %v3121_v57  ;;  %v3162_v57 = vld [vmem:[#allocation3 + $0x100] sm:$0xff]   ;;  %2621 = vmatprep.subr.bf16.mxu0 %v3160_v54  ;;  %v3161_v59 = vld [vmem:[#allocation3 + $0x38] sm:$0xff]  }
 0x1bf   :  { %v928_v12 = vmax.f32 %v900_v61, %v901_v63  ;;  %v839_v14 = vmax.f32 %v788_v17, %v790_v5  ;;  %v792_v22 = vpop.f32.mrb[46].mxu0  ;;  %v3232_v61 = vmov 0.0   ;;  %2622 = vmatpush3.bf16.msra.mxu0 %v3161_v59  ;;  %v3169_v63 = vld [vmem:[#allocation3 + $0x118] sm:$0xff]   ;;  %v3172_v17 = vld [vmem:[#allocation3 + $0x120] sm:$0xff]   ;;  %v3178_v5 = vld [vmem:[#allocation3 + $0x130] sm:$0xff]  }
 0x1c0   :  { %v794_v16 = vpop.f32.mrb[47].mxu0 }
 0x1c1   :  { %v874_v19 = vadd.f32 %v3881_v41, %v839_v14  ;;  %v840_v62 = vmax.f32 %v792_v22, %v794_v16  ;;  %v971_v20 = vpack.c.bf16 %v928_v12, %v926_v58  ;;  %1570 = vmatpush1.bf16.msra.mxu1 %v3119_v23  ;;  %v3137_v58 = vld [vmem:[%s4195_s3 + $0x250] ss:$8 sps:$4 sm:$0xff]   ;;  %v3175_v23 = vld [vmem:[#allocation3 + $0x128] sm:$0xff]   ;;  %v4101_v22 = vld [vmem:[%s4196_s4] ss:$0 sm:$0xff] }
 0x1c2   :  { %1622 = vmatprep.subr.bf16.mxu1 %v3124_v9  ;;  %v3181_v9 = vld [vmem:[#allocation3 + $0x138] sm:$0xff]  }
 0x1c3   :  { %v902_v45 = vmax.f32 %v874_v19, 0.0  ;;  %v875_v60 = vadd.f32 %v3881_v41, %v840_v62  ;;  %1528 = vmatprep.mubr.bf16.mxu1 %v971_v20 }
 0x1c4   :  { %1529 = vmatmul.mubr.bf16.gmra.mrb[16].mxu1 %v4009_v56 }
 0x1c5   :  { %v903_v0 = vmax.f32 %v875_v60, 0.0  ;;  %1571 = vmatprep.mubr.bf16.mxu1 %v3920_v34  ;;  %v798_v7 = vpop.f32.mrb[48].mxu0 }
 0x1c6   :  { %v800_v21 = vpop.f32.mrb[49].mxu0 }
 0x1c7   :  { %v930_v4 = vmax.f32 %v902_v45, %v903_v0  ;;  %v841_v25 = vmax.f32 %v798_v7, %v800_v21  ;;  %v802_v26 = vpop.f32.mrb[50].mxu0 }
 0x1c8   :  { %v804_v27 = vpop.f32.mrb[51].mxu0 }
 0x1c9   :  { %v876_v6 = vadd.f32 %v3881_v41, %v841_v25  ;;  %v842_v36 = vmax.f32 %v802_v26, %v804_v27  ;;  %v4029_v3 = vpack.c.bf16 %v930_v4, %v928_v12 }
 0x1cb   :  { %v904_v34 = vmax.f32 %v876_v6, 0.0  ;;  %v877_v29 = vadd.f32 %v3881_v41, %v842_v36 }
 0x1cc   :  { %1572 = vmatmul.mubr.bf16.vlgmr.msra.gmra.mrb[0].mxu1 %v3907_v18  ;;  %v3128_v18 = vld [vmem:[%s4195_s3 + $0x220] ss:$8 sps:$4 sm:$0xff]  }
 0x1cd   :  { %1623 = vmatpush1.bf16.msra.mxu1 %v3122_v28  ;;  %1581 = vmatprep.mubr.bf16.mxu1 %v3954_v15  ;;  %v905_v39 = vmax.f32 %v877_v29, 0.0  ;;  %v808_v52 = vpop.f32.mrb[52].mxu0 }
 0x1ce   :  { %1624 = vmatprep.subr.bf16.mxu1 %v3127_v37  ;;  %v810_v40 = vpop.f32.mrb[53].mxu0 }
 0x1cf   :  { %v932_v42 = vmax.f32 %v904_v34, %v905_v39  ;;  %v843_v2 = vmax.f32 %v808_v52, %v810_v40  ;;  %v812_v1 = vpop.f32.mrb[54].mxu0 }
 0x1d0   :  { %v814_v43 = vpop.f32.mrb[55].mxu0 }
 0x1d1   :  { %1625 = vmatpush1.bf16.msra.mxu1 %v3125_v24  ;;  %v878_v15 = vadd.f32 %v3881_v41, %v843_v2  ;;  %v844_v44 = vmax.f32 %v812_v1, %v814_v43  ;;  %v974_v10 = vpack.c.bf16 %v932_v42, %v930_v4  ;;  %v3165_v43 = vld [vmem:[#allocation3 + $0x80] sm:$0xff]  }
 0x1d2   :  { %1626 = vmatprep.subr.bf16.mxu1 %v3130_v48 }
 0x1d3   :  { %v906_v8 = vmax.f32 %v878_v15, 0.0  ;;  %v879_v11 = vadd.f32 %v3881_v41, %v844_v44  ;;  %v3134_v41 = vld [vmem:[%s4195_s3 + $0x240] ss:$8 sps:$4 sm:$0xff]  }
 0x1d4   :  { %1582 = vmatmul.mubr.bf16.gmra.mrb[4].mxu1 %v3941_v47  ;;  %v3167_v15 = vld [vmem:[#allocation3 + $0xc8] sm:$0xff]  }
 0x1d5   :  { %1591 = vmatprep.mubr.bf16.mxu1 %v3988_v46  ;;  %1627 = vmatpush1.bf16.msra.mxu1 %v3128_v18  ;;  %v907_v50 = vmax.f32 %v879_v11, 0.0  ;;  %v3139_v46 = vld [vmem:[%s4195_s3 + $0x254] ss:$8 sps:$4 sm:$0xff]   ;;  %v3168_v11 = vld [vmem:[#allocation3 + $0x88] sm:$0xff]  }
 0x1d6   :  { %1628 = vmatprep.subr.bf16.mxu1 %v3133_v13 }
 0x1d7   :  { %v934_v53 = vmax.f32 %v906_v8, %v907_v50  ;;  %v3170_v50 = vld [vmem:[#allocation3 + $0xd0] sm:$0xff]  }
 0x1d9   :  { %1629 = vmatpush1.bf16.msra.mxu1 %v3131_v49  ;;  %v975_v38 = vpack.c.bf16 %v934_v53, %v932_v42 }
 0x1da   :  { %1630 = vmatprep.subr.bf16.mxu1 %v3136_v51 }
 0x1dc   :  { %1592 = vmatmul.mubr.bf16.gmra.mrb[8].mxu1 %v3975_v35 }
 0x1dd   :  { %1601 = vmatprep.mubr.bf16.mxu1 %v971_v20  ;;  %1631 = vmatpush1.bf16.msra.mxu1 %v3134_v41 }
 0x1de   :  { %1632 = vmatprep.subr.bf16.mxu1 %v3139_v46 }
 0x1e1   :  { %1633 = vmatpush1.bf16.msra.mxu1 %v3137_v58 }
 0x1e2   :  { %1634 = vmatprep.subr.bf16.mxu1 %v3142_v55  ;;  %v3171_v55 = vld [vmem:[#allocation3 + $0x90] sm:$0xff]  }
 0x1e4   :  { %1602 = vmatmul.mubr.bf16.gmra.mrb[12].mxu1 %v4009_v56 }
 0x1e5   :  { %1611 = vmatprep.mubr.bf16.mxu1 %v974_v10  ;;  %1635 = vmatpush1.bf16.msra.mxu1 %v3140_v32  ;;  %v3173_v32 = vld [vmem:[#allocation3 + $0xd8] sm:$0xff]  }
 0x1e6   :  { %1636 = vmatprep.subr.bf16.mxu1 %v3145_v30 }
 0x1e9   :  { %1637 = vmatpush1.bf16.msra.mxu1 %v3143_v31 }
 0x1ea   :  { %2678 = vmatprep.subr.bf16.mxu1 %v3232_v61 }
 0x1ec   :  { %1612 = vmatmul.mubr.bf16.gmra.mrb[16].mxu1 %v4029_v3 }
 0x1ed   :  { %1654 = vmatprep.mubr.bf16.mxu1 %v3231_v33 }
 0x1f4   :  { %1655 = vmatmul.mubr.bf16.vlgmr.msra.gmra.mrb[0].mxu1 %v3941_v47  ;;  %v3163_v47 = vld [vmem:[#allocation3 + $0x108] sm:$0xff]  }
 0x1f5   :  { %1664 = vmatprep.mubr.bf16.mxu1 %v3231_v33  ;;  %2679 = vmatpush3.bf16.msra.mxu1 %v3162_v57  ;;  %v3174_v57 = vld [vmem:[#allocation3 + $0x98] sm:$0xff]  }
 0x1f6   :  { %2680 = vmatprep.subr.bf16.mxu1 %v3232_v61 }
 0x1f9   :  { %2681 = vmatpush3.bf16.msra.mxu1 %v3163_v47  ;;  %v3176_v47 = vld [vmem:[#allocation3 + $0xe0] sm:$0xff]  }
 0x1fa   :  { %2682 = vmatprep.subr.bf16.mxu1 %v3232_v61 }
 0x1fc   :  { %1665 = vmatmul.mubr.bf16.gmra.mrb[4].mxu1 %v3975_v35  ;;  %v3164_v35 = vld [vmem:[#allocation3 + $0xc0] sm:$0xff]  }
 0x1fd   :  { %1674 = vmatprep.mubr.bf16.mxu1 %v3231_v33  ;;  %2629 = vmatprep.subr.bf16.mxu0 %v3164_v35 }
 0x204   :  { %1675 = vmatmul.mubr.bf16.gmra.mrb[8].mxu1 %v4009_v56  ;;  %v3166_v56 = vld [vmem:[#allocation3 + $0x110] sm:$0xff]  }
 0x205   :  { %1684 = vmatprep.mubr.bf16.mxu1 %v3231_v33  ;;  %2683 = vmatpush3.bf16.msra.mxu1 %v3166_v56 }
 0x206   :  { %2684 = vmatprep.subr.bf16.mxu1 %v3232_v61 }
 0x209   :  { %2685 = vmatpush3.bf16.msra.mxu1 %v3169_v63 }
 0x20a   :  { %2686 = vmatprep.subr.bf16.mxu1 %v3232_v61 }
 0x20c   :  { %1685 = vmatmul.mubr.bf16.gmra.mrb[12].mxu1 %v4029_v3 }
 0x20d   :  { %1694 = vmatprep.mubr.bf16.mxu1 %v3231_v33  ;;  %2687 = vmatpush3.bf16.msra.mxu1 %v3172_v17 }
 0x20e   :  { %2688 = vmatprep.subr.bf16.mxu1 %v3232_v61 }
 0x211   :  { %2689 = vmatpush3.bf16.msra.mxu1 %v3175_v23 }
 0x212   :  { %2690 = vmatprep.subr.bf16.mxu1 %v3232_v61 }
 0x214   :  { %1695 = vmatmul.mubr.bf16.gmra.mrb[16].mxu1 %v975_v38 }
 0x215   :  { %2691 = vmatpush3.bf16.msra.mxu1 %v3178_v5  ;;  %2694 = vmatprep.mubr.msk.bf16.mxu1 %vm3233_vm3, %v3232_v61 }
 0x216   :  { %2692 = vmatprep.subr.bf16.mxu1 %v3232_v61 }
 0x219   :  { %2693 = vmatpush3.bf16.msra.mxu1 %v3181_v9 }
 0x21a   :  { %2718 = vmatprep.subr.bf16.mxu1 %v3232_v61 }
 0x2c7   :  { %v1656_v12 = vpop.f32.mrb[0].mxu1 }
 0x2c8   :  { %v1658_v14 = vpop.f32.mrb[1].mxu1 }
 0x2c9   :  { %v1705_v16 = vmax.f32 %v1656_v12, %v1658_v14  ;;  %v1660_v19 = vpop.f32.mrb[2].mxu1  ;;  %v3177_v12 = vld [vmem:[#allocation3 + $0xa0] sm:$0xff]   ;;  %v3179_v14 = vld [vmem:[#allocation3 + $0xe8] sm:$0xff]  }
 0x2ca   :  { %v1662_v62 = vpop.f32.mrb[3].mxu1 }
 0x2cb   :  { %v1722_v20 = vadd.f32 %v4101_v22, %v1705_v16  ;;  %v1706_v45 = vmax.f32 %v1660_v19, %v1662_v62 }
 0x2cd   :  { %v1723_v60 = vadd.f32 %v4101_v22, %v1706_v45  ;;  %v1732_v0 = vmax.f32 %v1722_v20, 0.0  ;;  %v3180_v20 = vld [vmem:[#allocation3 + $0xa8] sm:$0xff]   ;;  %v3182_v45 = vld [vmem:[#allocation3 + $0xf0] sm:$0xff]  }
 0x2cf   :  { %v1733_v7 = vmax.f32 %v1723_v60, 0.0  ;;  %v1666_v21 = vpop.f32.mrb[4].mxu1 }
 0x2d0   :  { %v1668_v4 = vpop.f32.mrb[5].mxu1 }
 0x2d1   :  { %v1742_v25 = vmax.f32 %v1732_v0, %v1733_v7  ;;  %v1707_v26 = vmax.f32 %v1666_v21, %v1668_v4  ;;  %v1670_v27 = vpop.f32.mrb[6].mxu1  ;;  %v3183_v7 = vld [vmem:[#allocation3 + $0xb0] sm:$0xff]   ;;  %v3184_v21 = vld [vmem:[#allocation3 + $0xf8] sm:$0xff]  }
 0x2d2   :  { %v1672_v28 = vpop.f32.mrb[7].mxu1  ;;  %v3185_v4 = vld [vmem:[#allocation3 + $0xb8] sm:$0xff]  }
 0x2d3   :  { %v1724_v6 = vadd.f32 %v4101_v22, %v1707_v26  ;;  %v1708_v36 = vmax.f32 %v1670_v27, %v1672_v28  ;;  %v1747_v18 = vpack.c.bf16 %v1742_v25, %v1742_v25  ;;  %v3186_v25 = vld [vmem:[%s4199_s7] sm:$0xff]   ;;  %v3187_v26 = vld [vmem:[%s4199_s7 + $0x8] sm:$0xff]   ;;  %v3188_v27 = vld [vmem:[%s4199_s7 + $0x10] sm:$0xff]  }
 0x2d4   :  { %v3189_v28 = vld [vmem:[%s4199_s7 + $0x18] sm:$0xff]  }
 0x2d5   :  { %v1725_v3 = vadd.f32 %v4101_v22, %v1708_v36  ;;  %v1734_v37 = vmax.f32 %v1724_v6, 0.0  ;;  %v3190_v6 = vld [vmem:[%s4199_s7 + $0x20] sm:$0xff]   ;;  %v3191_v36 = vld [vmem:[%s4199_s7 + $0x28] sm:$0xff]  }
 0x2d7   :  { %v1735_v34 = vmax.f32 %v1725_v3, 0.0  ;;  %v1676_v29 = vpop.f32.mrb[8].mxu1  ;;  %v3192_v3 = vld [vmem:[%s4199_s7 + $0x30] sm:$0xff]  }
 0x2d8   :  { %v1678_v24 = vpop.f32.mrb[9].mxu1 }
 0x2d9   :  { %v1709_v39 = vmax.f32 %v1676_v29, %v1678_v24  ;;  %v1680_v52 = vpop.f32.mrb[10].mxu1  ;;  %v1743_v48 = vmax.f32 %v1734_v37, %v1735_v34  ;;  %v3193_v37 = vld [vmem:[%s4199_s7 + $0x38] sm:$0xff]   ;;  %v3194_v34 = vld [vmem:[%s4201_s9] sm:$0xff]   ;;  %v3195_v29 = vld [vmem:[%s4201_s9 + $0x8] sm:$0xff]  }
 0x2da   :  { %v1682_v40 = vpop.f32.mrb[11].mxu1  ;;  %v3196_v24 = vld [vmem:[%s4201_s9 + $0x10] sm:$0xff]  }
 0x2db   :  { %v1726_v42 = vadd.f32 %v4101_v22, %v1709_v39  ;;  %v1710_v2 = vmax.f32 %v1680_v52, %v1682_v40  ;;  %v1748_v1 = vpack.c.bf16 %v1743_v48, %v1743_v48  ;;  %v3197_v39 = vld [vmem:[%s4201_s9 + $0x18] sm:$0xff]   ;;  %v3198_v52 = vld [vmem:[%s4201_s9 + $0x20] sm:$0xff]   ;;  %v3199_v48 = vld [vmem:[%s4201_s9 + $0x28] sm:$0xff]  }
 0x2dd   :  { %v1727_v44 = vadd.f32 %v4101_v22, %v1710_v2  ;;  %2111 = vmatprep.mubr.bf16.mxu0 %v1748_v1  ;;  %v1736_v10 = vmax.f32 %v1726_v42, 0.0 }
 0x2de   :  { %2112 = vmatmul.mubr.bf16.vlgmr.msra.gmra.mrb[56].mxu0 %v1747_v18 }
 0x2df   :  { %v1737_v13 = vmax.f32 %v1727_v44, 0.0  ;;  %2630 = vmatpush3.bf16.msra.mxu0 %v3165_v43  ;;  %v1686_v8 = vpop.f32.mrb[12].mxu1 }
 0x2e0   :  { %v1688_v49 = vpop.f32.mrb[13].mxu1  ;;  %2631 = vmatprep.subr.bf16.mxu0 %v3167_v15 }
 0x2e1   :  { %v1744_v51 = vmax.f32 %v1736_v10, %v1737_v13  ;;  %v1711_v53 = vmax.f32 %v1686_v8, %v1688_v49  ;;  %v1690_v41 = vpop.f32.mrb[14].mxu1  ;;  %v2548_v13 = vld [vmem:[%s4198_s6] ss:$0 sm:$0xff] }
 0x2e2   :  { %v1692_v38 = vpop.f32.mrb[15].mxu1 }
 0x2e3   :  { %v1728_v46 = vadd.f32 %v4101_v22, %v1711_v53  ;;  %v1712_v58 = vmax.f32 %v1690_v41, %v1692_v38  ;;  %2632 = vmatpush3.bf16.msra.mxu0 %v3168_v11 }
 0x2e4   :  { %2633 = vmatprep.subr.bf16.mxu0 %v3170_v50 }
 0x2e5   :  { %v1729_v30 = vadd.f32 %v4101_v22, %v1712_v58  ;;  %v1738_v31 = vmax.f32 %v1728_v46, 0.0 }
 0x2e7   :  { %v1739_v33 = vmax.f32 %v1729_v30, 0.0  ;;  %2634 = vmatpush3.bf16.msra.mxu0 %v3171_v55  ;;  %v1696_v54 = vpop.f32.mrb[16].mxu1  ;;  %v3200_v55 = vld [vmem:[%s4201_s9 + $0x30] sm:$0xff]   ;;  %v2589_v30 = vld [vmem:[%s4200_s8] ss:$0 sm:$0xff] }
 0x2e8   :  { %v1698_v59 = vpop.f32.mrb[17].mxu1  ;;  %2635 = vmatprep.subr.bf16.mxu0 %v3173_v32  ;;  %v3201_v32 = vld [vmem:[%s4201_s9 + $0x38] sm:$0xff]  }
 0x2e9   :  { %v1713_v35 = vmax.f32 %v1696_v54, %v1698_v59  ;;  %v1700_v56 = vpop.f32.mrb[18].mxu1  ;;  %v1745_v63 = vmax.f32 %v1738_v31, %v1739_v33 }
 0x2ea   :  { %v1702_v17 = vpop.f32.mrb[19].mxu1 }
 0x2eb   :  { %v1730_v23 = vadd.f32 %v4101_v22, %v1713_v35  ;;  %v1714_v5 = vmax.f32 %v1700_v56, %v1702_v17  ;;  %2636 = vmatpush3.bf16.msra.mxu0 %v3174_v57  ;;  %v1750_v9 = vpack.c.bf16 %v1745_v63, %v1745_v63 }
 0x2ec   :  { %2637 = vmatprep.subr.bf16.mxu0 %v3176_v47 }
 0x2ed   :  { %v1731_v16 = vadd.f32 %v4101_v22, %v1714_v5  ;;  %2151 = vmatprep.mubr.bf16.mxu0 %v1750_v9  ;;  %v1740_v19 = vmax.f32 %v1730_v23, 0.0  ;;  %v1749_v22 = vpack.c.bf16 %v1744_v51, %v1744_v51 }
 0x2ef   :  { %v1741_v62 = vmax.f32 %v1731_v16, 0.0  ;;  %2638 = vmatpush3.bf16.msra.mxu0 %v3177_v12 }
 0x2f0   :  { %2639 = vmatprep.subr.bf16.mxu0 %v3179_v14 }
 0x2f1   :  { %v1746_v60 = vmax.f32 %v1740_v19, %v1741_v62 }
 0x2f3   :  { %v1751_v0 = vpack.c.bf16 %v1746_v60, %v1746_v60  ;;  %2640 = vmatpush3.bf16.msra.mxu0 %v3180_v20 }
 0x2f4   :  { %2641 = vmatprep.subr.bf16.mxu0 %v3182_v45 }
 0x2f5   :  { %2695 = vmatmul.mubr.bf16.vlgmr.msra.gmra.mrb[20].mxu1 %v1751_v0 }
 0x2f6   :  { %2734 = vmatprep.mubr.msk.bf16.mxu1 %vm3233_vm3, %v3232_v61  ;;  %2719 = vmatpush3.bf16.msra.mxu1 %v3194_v34 }
 0x2f7   :  { %2642 = vmatpush3.bf16.msra.mxu0 %v3183_v7  ;;  %2720 = vmatprep.subr.bf16.mxu1 %v3232_v61 }
 0x2f8   :  { %2643 = vmatprep.subr.bf16.mxu0 %v3184_v21 }
 0x2fa   :  { %2721 = vmatpush3.bf16.msra.mxu1 %v3195_v29 }
 0x2fb   :  { %2644 = vmatpush3.bf16.msra.mxu0 %v3185_v4  ;;  %2722 = vmatprep.subr.bf16.mxu1 %v3232_v61 }
 0x2fc   :  { %2698 = vmatprep.subr.bf16.mxu0 %v3232_v61 }
 0x2fe   :  { %2152 = vmatmul.mubr.bf16.vlgmr.msra.gmra.mrb[60].mxu0 %v1749_v22  ;;  %2723 = vmatpush3.bf16.msra.mxu1 %v3196_v24 }
 0x2ff   :  { %2714 = vmatprep.mubr.msk.bf16.mxu0 %vm3233_vm3, %v3232_v61  ;;  %2699 = vmatpush3.bf16.msra.mxu0 %v3186_v25 }
 0x300   :  { %2700 = vmatprep.subr.bf16.mxu0 %v3232_v61  ;;  %2724 = vmatprep.subr.bf16.mxu1 %v3232_v61 }
 0x302   :  { %2725 = vmatpush3.bf16.msra.mxu1 %v3197_v39 }
 0x303   :  { %2701 = vmatpush3.bf16.msra.mxu0 %v3187_v26  ;;  %2726 = vmatprep.subr.bf16.mxu1 %v3232_v61 }
 0x304   :  { %2702 = vmatprep.subr.bf16.mxu0 %v3232_v61 }
 0x306   :  { %2727 = vmatpush3.bf16.msra.mxu1 %v3198_v52 }
 0x307   :  { %2703 = vmatpush3.bf16.msra.mxu0 %v3188_v27  ;;  %2728 = vmatprep.subr.bf16.mxu1 %v3232_v61 }
 0x308   :  { %2704 = vmatprep.subr.bf16.mxu0 %v3232_v61 }
 0x30a   :  { %2729 = vmatpush3.bf16.msra.mxu1 %v3199_v48 }
 0x30b   :  { %2705 = vmatpush3.bf16.msra.mxu0 %v3189_v28  ;;  %2730 = vmatprep.subr.bf16.mxu1 %v3232_v61 }
 0x30c   :  { %2706 = vmatprep.subr.bf16.mxu0 %v3232_v61 }
 0x30e   :  { %2731 = vmatpush3.bf16.msra.mxu1 %v3200_v55 }
 0x30f   :  { %2707 = vmatpush3.bf16.msra.mxu0 %v3190_v6  ;;  %2732 = vmatprep.subr.bf16.mxu1 %v3232_v61 }
 0x310   :  { %2708 = vmatprep.subr.bf16.mxu0 %v3232_v61 }
 0x312   :  { %2733 = vmatpush3.bf16.msra.mxu1 %v3201_v32 }
 0x313   :  { %2709 = vmatpush3.bf16.msra.mxu0 %v3191_v36 }
 0x314   :  { %2710 = vmatprep.subr.bf16.mxu0 %v3232_v61 }
 0x317   :  { %2711 = vmatpush3.bf16.msra.mxu0 %v3192_v3 }
 0x318   :  { %2712 = vmatprep.subr.bf16.mxu0 %v3232_v61  ;;  %v2598_v61 = vld [vmem:[%s4202_s10] ss:$0 sm:$0xff] }
 0x31b   :  { %2713 = vmatpush3.bf16.msra.mxu0 %v3193_v37 }
 0x3b1   :  { %v2623_v40 = vpop.f32.mrb[56].mxu0 }
 0x3b2   :  { %v2624_v42 = vpop.f32.mrb[57].mxu0 }
 0x3b3   :  { %v2625_v2 = vadd.f32 %v2624_v42, %v2623_v40  ;;  %v2626_v1 = vpop.f32.mrb[58].mxu0 }
 0x3b4   :  { %v2627_v43 = vpop.f32.mrb[59].mxu0 }
 0x3b5   :  { %v2114_v49 = vadd.f32 %v2625_v2, %v2548_v13 }
 0x3c8   :  { %v2193_v18 = vpop.f32.mrb[20].mxu1 }
 0x3c9   :  { %v2696_v15 = vpop.f32.mrb[21].mxu1 }
 0x3ca   :  { %v2196_v44 = vpop.f32.mrb[22].mxu1 }
 0x3cb   :  { %v2697_v10 = vpop.f32.mrb[23].mxu1 }
 0x3d1   :  { %v2645_v8 = vpop.f32.mrb[60].mxu0 }
 0x3d2   :  { %v2646_v11 = vpop.f32.mrb[61].mxu0 }
 0x3d3   :  { %v2647_v50 = vadd.f32 %v2646_v11, %v2645_v8  ;;  %v2648_v51 = vpop.f32.mrb[62].mxu0 }
 0x3d4   :  { %v2649_v53 = vpop.f32.mrb[63].mxu0 }
 0x3d5   :  { %v2154_v41 = vadd.f32 %v2647_v50, %v2114_v49 }
 0x3d7   :  { %v2194_v38 = vadd.f32 %v2193_v18, %v2154_v41 }
 0x3d9   :  { %v2199_v46 = vmax.f32 %v2194_v38, 0.0 }
 0x3db   :  { %v2200_v58 = vpack.c.bf16 %v2199_v46, %v2199_v46 }
 0x3dd   :  { %2715 = vmatmul.mubr.bf16.vlgmr.msra.gmra.mrb[64].mxu0 %v2200_v58 }
 0x4b0   :  { %v2306_v31 = vpop.f32.mrb[64].mxu0 }
 0x4b1   :  { %v2307_v33 = vadd.f32 %v2589_v30, %v2306_v31  ;;  %v2716_v54 = vpop.f32.mrb[65].mxu0 }
 0x4b2   :  { %v2309_v57 = vpop.f32.mrb[66].mxu0 }
 0x4b3   :  { %v2312_v59 = vmax.f32 %v2307_v33, 0.0  ;;  %v2717_v47 = vpop.f32.mrb[67].mxu0 }
 0x4b5   :  { %v2313_v35 = vpack.c.bf16 %v2312_v59, %v2312_v59 }
 0x4b7   :  { %2735 = vmatmul.mubr.bf16.vlgmr.msra.gmra.mrb[24].mxu1 %v2313_v35 }
 0x58a   :  { %v2419_v56 = vpop.f32.mrb[24].mxu1 }
 0x58b   :  { %v2420_v63 = vadd.f32 %v2598_v61, %v2419_v56  ;;  %v2736_v17 = vpop.f32.mrb[25].mxu1 }
 0x58c   :  { %v2422_v23 = vpop.f32.mrb[26].mxu1 }
 0x58d   :  { %2426 = vst.msk [vmem:[%s4203_s11] sm:$0xff] %vm2425_vm4, %v2420_v63  ;;  %v2737_v5 = vpop.f32.mrb[27].mxu1 }
 0x58e   :  { %2431 = vsyncpa [#allocation4], 1 }

</bundles_post_ra>
